<compile_context>
chip_gen: v7x
topology: tpu7x:2x2x1
jax: 0.10.0
libtpu: 0.0.40
codegen_flags: <defaults>
</compile_context>

<pallas_src>
import functools

import numpy as np
import jax
import jax.numpy as jnp
from jax.experimental import pallas as pl
from jax.experimental.pallas import tpu as pltpu


_VMEM = pl.BlockSpec(memory_space=pltpu.MemorySpace.VMEM)


# ----------------------------------------------------------------------------
# Fused Pallas kernel: bidirectional GRU (prem+hypo stacked) + scoring MLP
# ----------------------------------------------------------------------------
def fused_rnn_kernel(x_ref,       # [T*B2P, E]   bf16, rows ordered (t, padded batch)
                     wih_ref,     # [E, 2*GW]    bf16, lanes [fwd r|z|n|0.. | bwd r|z|n|0..]
                     bih_ref,     # [1, 2*GW]    f32  (bhh_r / bhh_z already folded in)
                     whh_ref,     # [2, H, 3H]   bf16, axis0 = (fwd, bwd)
                     bhhn_ref,    # [2, 1, H]    f32, n-gate recurrent bias only
                     w1_ref,      # [4H, H]      bf16
                     b1_ref,      # [1, H]       f32
                     w2_ref,      # [H, CPAD]    bf16 (zero padded)
                     b2_ref,      # [1, CPAD]    f32  (zero padded)
                     out_ref,     # [B, CPAD]    f32
                     *, T, B, B2P, H, GW):
    f32 = jnp.float32
    bf16 = jnp.bfloat16
    H2, H3 = 2 * H, 3 * H

    # ---- (1) Hoisted input projection: one large MXU matmul for all
    #          timesteps, both sequences and both directions. The r/z
    #          recurrent biases are pre-folded into bih. ----------------------
    gi_all = jnp.dot(x_ref[...], wih_ref[...], preferred_element_type=f32)
    gi_all = gi_all + bih_ref[...]                      # [T*B2P, 2*GW] f32

    # Per-direction views: fwd gates start at lane 0, bwd at lane GW (128-aligned).
    gi_f = gi_all[:, :H3]
    gi_b = gi_all[:, GW:GW + H3]

    whh_f = whh_ref[0]                                  # [H, 3H] bf16
    whh_b = whh_ref[1]
    bhn_f = bhhn_ref[0]                                 # [1, H]  f32
    bhn_b = bhhn_ref[1]

    def rows(a, t):                                     # sublane-aligned (B2P % 8 == 0)
        return a[t * B2P:(t + 1) * B2P]

    h_f = jnp.zeros((B2P, H), f32)
    h_b = jnp.zeros((B2P, H), f32)

    # ---- (2) Recurrence: ONE merged [H,3H] matmul per direction per step,
    #          fwd and bwd interleaved; fully unrolled (T small & static). -----
    # TODO(synk): for production T, stream gi through a VMEM scratch +
    # lax.fori_loop (bounded live ranges) instead of full Python unrolling.
    for i in range(T):
        tb = T - 1 - i
        gh_f = jnp.dot(h_f.astype(bf16), whh_f, preferred_element_type=f32)
        gh_b = jnp.dot(h_b.astype(bf16), whh_b, preferred_element_type=f32)
        gif = rows(gi_f, i)                             # [B2P, 3H]
        gib = rows(gi_b, tb)

        # forward direction (time i): single sigmoid over the r|z slab
        rz_f = jax.nn.sigmoid(gif[:, :H2] + gh_f[:, :H2])
        n_f = jnp.tanh(gif[:, H2:] + rz_f[:, :H] * (gh_f[:, H2:] + bhn_f))
        z_f = rz_f[:, H:]
        h_f = (1.0 - z_f) * n_f + z_f * h_f

        # backward direction (time T-1-i)
        rz_b = jax.nn.sigmoid(gib[:, :H2] + gh_b[:, :H2])
        n_b = jnp.tanh(gib[:, H2:] + rz_b[:, :H] * (gh_b[:, H2:] + bhn_b))
        z_b = rz_b[:, H:]
        h_b = (1.0 - z_b) * n_b + z_b * h_b

    # ---- (3) Fused scoring MLP. Rows [0:B] of h_* are the premise batch,
    #          rows [B:2B] the hypothesis batch. Lane-concat the four H-wide
    #          blocks into one [B, 4H=128] operand -> single K=128 matmul. -----
    ph = jnp.concatenate([h_f[:B], h_b[:B], h_f[B:2 * B], h_b[B:2 * B]], axis=1)
    h1 = jnp.dot(ph.astype(bf16), w1_ref[...], preferred_element_type=f32) + b1_ref[...]
    h1 = jnp.maximum(h1, 0.0)                           # ReLU (Dropout = identity)
    out_ref[...] = (jnp.dot(h1.astype(bf16), w2_ref[...],
                            preferred_element_type=f32) + b2_ref[...])


# ----------------------------------------------------------------------------
# Wrappers
# ----------------------------------------------------------------------------
def _prepare_kernel_params(params):
    """Restructure PyTorch-layout params into kernel-friendly form."""
    bf16 = jnp.bfloat16
    E, H3 = params["wih_f"].shape
    H = H3 // 3
    H2 = 2 * H
    C = params["w2"].shape[1]
    CPAD = -(-C // 128) * 128
    GW = -(-H3 // 128) * 128          # per-direction lane stride (128-aligned)

    # Input-projection weights, each direction padded to a 128-lane stride.
    wih = jnp.zeros((E, 2 * GW), jnp.float32)
    wih = wih.at[:, :H3].set(params["wih_f"]).at[:, GW:GW + H3].set(params["wih_b"])
    wih = wih.astype(bf16)

    # Input-projection bias with bhh_r / bhh_z folded in (bhh_n stays separate).
    bih = jnp.zeros((1, 2 * GW), jnp.float32)
    bih = bih.at[:, :H2].set(params["bih_f"][:, :H2] + params["bhh_f"][:, :H2])
    bih = bih.at[:, H2:H3].set(params["bih_f"][:, H2:])
    bih = bih.at[:, GW:GW + H2].set(params["bih_b"][:, :H2] + params["bhh_b"][:, :H2])
    bih = bih.at[:, GW + H2:GW + H3].set(params["bih_b"][:, H2:])

    whh = jnp.stack([params["whh_f"], params["whh_b"]], axis=0).astype(bf16)      # [2,H,3H]
    bhhn = jnp.stack([params["bhh_f"][:, H2:], params["bhh_b"][:, H2:]], axis=0)  # [2,1,H]

    w1 = params["w1"].astype(bf16)                                                # [4H,H]
    b1 = params["b1"]                                                             # [1,H]
    w2 = jnp.zeros((H, CPAD), jnp.float32).at[:, :C].set(params["w2"]).astype(bf16)
    b2 = jnp.zeros((1, CPAD), jnp.float32).at[:, :C].set(params["b2"])
    return dict(wih=wih, bih=bih, whh=whh, bhhn=bhhn, w1=w1, b1=b1,
                w2=w2, b2=b2, H=H, C=C, CPAD=CPAD, GW=GW)


def rnn_model_forward(params, prem, hypo, p_len=None, h_len=None):
    # p_len / h_len are unused by the reference forward pass as well.
    kp = _prepare_kernel_params(params)
    B, T = prem.shape
    E = params["embedding"].shape[1]
    H, C, CPAD, GW = kp["H"], kp["C"], kp["CPAD"], kp["GW"]
    B2 = 2 * B
    B2P = -(-B2 // 8) * 8            # pad stacked batch to a full sublane group

    # Time-major tokens FIRST (transpose the tiny int matrix, not the embedded
    # activation); premise and hypothesis stacked on the batch axis; padded
    # batch rows are zero activations (discarded at the end).
    # TODO(synk): for production vocab/E, fuse this gather into the kernel
    # (scalar-prefetch token ids + memory_space=pl.ANY embedding, DMA gather).
    tokens = jnp.concatenate([prem.T, hypo.T], axis=1)           # [T, 2B]
    x = jnp.take(params["embedding"], tokens, axis=0)            # [T, 2B, E]
    x = jnp.pad(x, ((0, 0), (0, B2P - B2), (0, 0)))              # [T, B2P, E]
    x = x.reshape(T * B2P, E).astype(jnp.bfloat16)               # [T*B2P, E]

    # TODO(synk): at production batch sizes add a batch-tile grid with
    # dimension_semantics=("parallel",) so v7x uses both TensorCores, and set
    # vmem_limit_bytes when the streamed-T version lands (64 MiB VMEM on v7x).
    out = pl.pallas_call(
        functools.partial(fused_rnn_kernel, T=T, B=B, B2P=B2P, H=H, GW=GW),
        out_shape=jax.ShapeDtypeStruct((B, CPAD), jnp.float32),
        in_specs=[_VMEM] * 9,
        out_specs=_VMEM,
    )(x, kp["wih"], kp["bih"], kp["whh"], kp["bhhn"],
      kp["w1"], kp["b1"], kp["w2"], kp["b2"])
    return out[:, :C]


# ----------------------------------------------------------------------------
# Pure-JAX reference (same math & same bf16 matmul inputs / f32 accumulation)
# ----------------------------------------------------------------------------
def _gru_dir_ref(x_tbe_bf16, wih_bf16, whh_bf16, bih, bhh, reverse):
    T, Bc, _ = x_tbe_bf16.shape
    H = whh_bf16.shape[0]
    h = jnp.zeros((Bc, H), jnp.float32)
    order = range(T - 1, -1, -1) if reverse else range(T)
    for t in order:
        gi = jnp.dot(x_tbe_bf16[t], wih_bf16, preferred_element_type=jnp.float32) + bih
        gh = jnp.dot(h.astype(jnp.bfloat16), whh_bf16,
                     preferred_element_type=jnp.float32) + bhh
        r = jax.nn.sigmoid(gi[:, :H] + gh[:, :H])
        z = jax.nn.sigmoid(gi[:, H:2 * H] + gh[:, H:2 * H])
        n = jnp.tanh(gi[:, 2 * H:] + r * gh[:, 2 * H:])
        h = (1.0 - z) * n + z * h
    return h


def rnn_model_reference(params, prem, hypo):
    bf16 = jnp.bfloat16
    emb = params["embedding"]
    wih_f, whh_f = params["wih_f"].astype(bf16), params["whh_f"].astype(bf16)
    wih_b, whh_b = params["wih_b"].astype(bf16), params["whh_b"].astype(bf16)

    def enc(tokens_bt):
        x = jnp.take(emb, tokens_bt.T, axis=0).astype(bf16)   # [T, B, E]
        hf = _gru_dir_ref(x, wih_f, whh_f, params["bih_f"], params["bhh_f"], False)
        hb = _gru_dir_ref(x, wih_b, whh_b, params["bih_b"], params["bhh_b"], True)
        return jnp.concatenate([hf, hb], axis=1)

    ph = jnp.concatenate([enc(prem), enc(hypo)], axis=1)       # [B, 4H] f32
    h = jnp.dot(ph.astype(bf16), params["w1"].astype(bf16),
                preferred_element_type=jnp.float32) + params["b1"]
    h = jnp.maximum(h, 0.0)
    return jnp.dot(h.astype(bf16), params["w2"].astype(bf16),
                   preferred_element_type=jnp.float32) + params["b2"]


# ----------------------------------------------------------------------------
# Deterministic parameter init (shapes from the PyTorch module __init__)
# ----------------------------------------------------------------------------
def init_params(key, vocab_size, emb_size, hidden_size, num_classes):
    ks = jax.random.split(key, 16)
    H, E = hidden_size, emb_size
    bound_g = 1.0 / np.sqrt(H)

    def u(k, shape, bound):
        return jax.random.uniform(k, shape, jnp.float32, -bound, bound)

    return {
        "embedding": jax.random.normal(ks[0], (vocab_size, E), jnp.float32),
        # GRU, gate order (r, z, n); stored pre-transposed: [E,3H] / [H,3H]
        "wih_f": u(ks[1], (E, 3 * H), bound_g),
        "whh_f": u(ks[2], (H, 3 * H), bound_g),
        "bih_f": u(ks[3], (1, 3 * H), bound_g),
        "bhh_f": u(ks[4], (1, 3 * H), bound_g),
        "wih_b": u(ks[5], (E, 3 * H), bound_g),
        "whh_b": u(ks[6], (H, 3 * H), bound_g),
        "bih_b": u(ks[7], (1, 3 * H), bound_g),
        "bhh_b": u(ks[8], (1, 3 * H), bound_g),
        # Scoring MLP: Linear(4H->H), Linear(H->C); stored as [in, out]
        "w1": u(ks[9], (4 * H, H), 1.0 / np.sqrt(4 * H)),
        "b1": u(ks[10], (1, H), 1.0 / np.sqrt(4 * H)),
        "w2": u(ks[11], (H, num_classes), 1.0 / np.sqrt(H)),
        "b2": u(ks[12], (1, num_classes), 1.0 / np.sqrt(H)),
    }


# TODO(synk): dropout layers are eval-mode identity; num_layers is fixed to 1,
# the only configuration the reference Encoder.forward supports (h0 is (2,B,H)).

if __name__ == "__main__":
    B, T = 2, 8
    VOCAB, EMB = 50, 32
    HIDDEN, CLASSES = 32, 3

    key = jax.random.PRNGKey(0)
    pkey, dkey1, dkey2 = jax.random.split(key, 3)
    params = init_params(pkey, VOCAB, EMB, HIDDEN, CLASSES)

    prem = jax.random.randint(dkey1, (B, T), 0, VOCAB, dtype=jnp.int32)
    hypo = jax.random.randint(dkey2, (B, T), 0, VOCAB, dtype=jnp.int32)
    p_len = jnp.full((B,), T, jnp.int32)
    h_len = jnp.full((B,), T, jnp.int32)

    out = jax.block_until_ready(rnn_model_forward(params, prem, hypo, p_len, h_len))
    ref = jax.block_until_ready(rnn_model_reference(params, prem, hypo))

    np.testing.assert_allclose(np.asarray(out, np.float32), np.asarray(ref, np.float32),
                               rtol=2e-3, atol=2e-3)
    assert out.shape == (B, CLASSES)

    print("KERNEL_OK")
</pallas_src>

<mosaic_0001>
module attributes {stable_mosaic.version = 11 : i64} {
  func.func @fused_rnn_kernel(%arg0: memref<64x32xbf16, #tpu.memory_space<vmem>>, %arg1: memref<32x256xbf16, #tpu.memory_space<vmem>>, %arg2: memref<1x256xf32, #tpu.memory_space<vmem>>, %arg3: memref<2x32x96xbf16, #tpu.memory_space<vmem>>, %arg4: memref<2x1x32xf32, #tpu.memory_space<vmem>>, %arg5: memref<128x32xbf16, #tpu.memory_space<vmem>>, %arg6: memref<1x32xf32, #tpu.memory_space<vmem>>, %arg7: memref<32x128xbf16, #tpu.memory_space<vmem>>, %arg8: memref<1x128xf32, #tpu.memory_space<vmem>>, %arg9: memref<2x128xf32, #tpu.memory_space<vmem>>) attributes {dimension_semantics = [], scalar_prefetch = 0 : i64, scratch_operands = 0 : i64, tpu.core_type = #tpu.core_type<tc>} {
    %c0 = arith.constant 0 : index
    %c0_0 = arith.constant 0 : index
    %0 = vector.load %arg0[%c0, %c0_0] : memref<64x32xbf16, #tpu.memory_space<vmem>>, vector<64x32xbf16>
    %c0_1 = arith.constant 0 : index
    %c0_2 = arith.constant 0 : index
    %1 = vector.load %arg1[%c0_1, %c0_2] : memref<32x256xbf16, #tpu.memory_space<vmem>>, vector<32x256xbf16>
    %cst = arith.constant dense<0.000000e+00> : vector<64x256xf32>
    %2 = tpu.matmul %0, %1, %cst {dimension_numbers = #tpu.dot_dimension_numbers<[1], [0], [0], [1], [0, 0, 1, 1], [], []>} : vector<64x32xbf16>, vector<32x256xbf16>, vector<64x256xf32> -> vector<64x256xf32>
    %c0_3 = arith.constant 0 : index
    %c0_4 = arith.constant 0 : index
    %3 = vector.load %arg2[%c0_3, %c0_4] : memref<1x256xf32, #tpu.memory_space<vmem>>, vector<1x256xf32>
    %4 = vector.broadcast %3 : vector<1x256xf32> to vector<64x256xf32>
    %5 = arith.addf %2, %4 : vector<64x256xf32>
    %6 = vector.extract_strided_slice %5 {offsets = [0, 0], sizes = [64, 96], strides = [1, 1]} : vector<64x256xf32> to vector<64x96xf32>
    %7 = vector.extract_strided_slice %5 {offsets = [0, 128], sizes = [64, 96], strides = [1, 1]} : vector<64x256xf32> to vector<64x96xf32>
    %c0_5 = arith.constant 0 : index
    %c0_6 = arith.constant 0 : index
    %c0_7 = arith.constant 0 : index
    %8 = vector.load %arg3[%c0_5, %c0_6, %c0_7] : memref<2x32x96xbf16, #tpu.memory_space<vmem>>, vector<1x32x96xbf16>
    %9 = vector.shape_cast %8 : vector<1x32x96xbf16> to vector<32x96xbf16>
    %c1 = arith.constant 1 : index
    %c0_8 = arith.constant 0 : index
    %c0_9 = arith.constant 0 : index
    %10 = vector.load %arg3[%c1, %c0_8, %c0_9] : memref<2x32x96xbf16, #tpu.memory_space<vmem>>, vector<1x32x96xbf16>
    %11 = vector.shape_cast %10 : vector<1x32x96xbf16> to vector<32x96xbf16>
    %c0_10 = arith.constant 0 : index
    %c0_11 = arith.constant 0 : index
    %c0_12 = arith.constant 0 : index
    %12 = vector.load %arg4[%c0_10, %c0_11, %c0_12] : memref<2x1x32xf32, #tpu.memory_space<vmem>>, vector<1x1x32xf32>
    %13 = vector.shape_cast %12 : vector<1x1x32xf32> to vector<1x32xf32>
    %c1_13 = arith.constant 1 : index
    %c0_14 = arith.constant 0 : index
    %c0_15 = arith.constant 0 : index
    %14 = vector.load %arg4[%c1_13, %c0_14, %c0_15] : memref<2x1x32xf32, #tpu.memory_space<vmem>>, vector<1x1x32xf32>
    %15 = vector.shape_cast %14 : vector<1x1x32xf32> to vector<1x32xf32>
    %cst_16 = arith.constant 0.000000e+00 : f32
    %16 = vector.broadcast %cst_16 : f32 to vector<8x32xf32>
    %cst_17 = arith.constant 0.000000e+00 : f32
    %17 = vector.broadcast %cst_17 : f32 to vector<8x32xf32>
    %18 = arith.truncf %16 : vector<8x32xf32> to vector<8x32xbf16>
    %cst_18 = arith.constant dense<0.000000e+00> : vector<8x96xf32>
    %19 = tpu.matmul %18, %9, %cst_18 {dimension_numbers = #tpu.dot_dimension_numbers<[1], [0], [0], [1], [0, 0, 1, 1], [], []>} : vector<8x32xbf16>, vector<32x96xbf16>, vector<8x96xf32> -> vector<8x96xf32>
    %20 = arith.truncf %17 : vector<8x32xf32> to vector<8x32xbf16>
    %cst_19 = arith.constant dense<0.000000e+00> : vector<8x96xf32>
    %21 = tpu.matmul %20, %11, %cst_19 {dimension_numbers = #tpu.dot_dimension_numbers<[1], [0], [0], [1], [0, 0, 1, 1], [], []>} : vector<8x32xbf16>, vector<32x96xbf16>, vector<8x96xf32> -> vector<8x96xf32>
    %22 = vector.extract_strided_slice %6 {offsets = [0, 0], sizes = [8, 96], strides = [1, 1]} : vector<64x96xf32> to vector<8x96xf32>
    %23 = vector.extract_strided_slice %7 {offsets = [56, 0], sizes = [8, 96], strides = [1, 1]} : vector<64x96xf32> to vector<8x96xf32>
    %24 = vector.extract_strided_slice %22 {offsets = [0, 0], sizes = [8, 64], strides = [1, 1]} : vector<8x96xf32> to vector<8x64xf32>
    %25 = vector.extract_strided_slice %19 {offsets = [0, 0], sizes = [8, 64], strides = [1, 1]} : vector<8x96xf32> to vector<8x64xf32>
    %26 = arith.addf %24, %25 : vector<8x64xf32>
    %27 = arith.negf %26 : vector<8x64xf32>
    %28 = math.exp %27 : vector<8x64xf32>
    %cst_20 = arith.constant 1.000000e+00 : f32
    %29 = vector.broadcast %cst_20 : f32 to vector<8x64xf32>
    %30 = arith.addf %29, %28 : vector<8x64xf32>
    %31 = arith.divf %29, %30 : vector<8x64xf32>
    %32 = vector.extract_strided_slice %22 {offsets = [0, 64], sizes = [8, 32], strides = [1, 1]} : vector<8x96xf32> to vector<8x32xf32>
    %33 = vector.extract_strided_slice %31 {offsets = [0, 0], sizes = [8, 32], strides = [1, 1]} : vector<8x64xf32> to vector<8x32xf32>
    %34 = vector.extract_strided_slice %19 {offsets = [0, 64], sizes = [8, 32], strides = [1, 1]} : vector<8x96xf32> to vector<8x32xf32>
    %35 = vector.broadcast %13 : vector<1x32xf32> to vector<8x32xf32>
    %36 = arith.addf %34, %35 : vector<8x32xf32>
    %37 = arith.mulf %33, %36 : vector<8x32xf32>
    %38 = arith.addf %32, %37 : vector<8x32xf32>
    %39 = math.tanh %38 : vector<8x32xf32>
    %40 = vector.extract_strided_slice %31 {offsets = [0, 32], sizes = [8, 32], strides = [1, 1]} : vector<8x64xf32> to vector<8x32xf32>
    %cst_21 = arith.constant 1.000000e+00 : f32
    %41 = vector.broadcast %cst_21 : f32 to vector<8x32xf32>
    %42 = arith.subf %41, %40 : vector<8x32xf32>
    %43 = arith.mulf %42, %39 : vector<8x32xf32>
    %44 = arith.mulf %40, %16 : vector<8x32xf32>
    %45 = arith.addf %43, %44 : vector<8x32xf32>
    %46 = vector.extract_strided_slice %23 {offsets = [0, 0], sizes = [8, 64], strides = [1, 1]} : vector<8x96xf32> to vector<8x64xf32>
    %47 = vector.extract_strided_slice %21 {offsets = [0, 0], sizes = [8, 64], strides = [1, 1]} : vector<8x96xf32> to vector<8x64xf32>
    %48 = arith.addf %46, %47 : vector<8x64xf32>
    %49 = arith.negf %48 : vector<8x64xf32>
    %50 = math.exp %49 : vector<8x64xf32>
    %cst_22 = arith.constant 1.000000e+00 : f32
    %51 = vector.broadcast %cst_22 : f32 to vector<8x64xf32>
    %52 = arith.addf %51, %50 : vector<8x64xf32>
    %53 = arith.divf %51, %52 : vector<8x64xf32>
    %54 = vector.extract_strided_slice %23 {offsets = [0, 64], sizes = [8, 32], strides = [1, 1]} : vector<8x96xf32> to vector<8x32xf32>
    %55 = vector.extract_strided_slice %53 {offsets = [0, 0], sizes = [8, 32], strides = [1, 1]} : vector<8x64xf32> to vector<8x32xf32>
    %56 = vector.extract_strided_slice %21 {offsets = [0, 64], sizes = [8, 32], strides = [1, 1]} : vector<8x96xf32> to vector<8x32xf32>
    %57 = vector.broadcast %15 : vector<1x32xf32> to vector<8x32xf32>
    %58 = arith.addf %56, %57 : vector<8x32xf32>
    %59 = arith.mulf %55, %58 : vector<8x32xf32>
    %60 = arith.addf %54, %59 : vector<8x32xf32>
    %61 = math.tanh %60 : vector<8x32xf32>
    %62 = vector.extract_strided_slice %53 {offsets = [0, 32], sizes = [8, 32], strides = [1, 1]} : vector<8x64xf32> to vector<8x32xf32>
    %cst_23 = arith.constant 1.000000e+00 : f32
    %63 = vector.broadcast %cst_23 : f32 to vector<8x32xf32>
    %64 = arith.subf %63, %62 : vector<8x32xf32>
    %65 = arith.mulf %64, %61 : vector<8x32xf32>
    %66 = arith.mulf %62, %17 : vector<8x32xf32>
    %67 = arith.addf %65, %66 : vector<8x32xf32>
    %68 = arith.truncf %45 : vector<8x32xf32> to vector<8x32xbf16>
    %cst_24 = arith.constant dense<0.000000e+00> : vector<8x96xf32>
    %69 = tpu.matmul %68, %9, %cst_24 {dimension_numbers = #tpu.dot_dimension_numbers<[1], [0], [0], [1], [0, 0, 1, 1], [], []>} : vector<8x32xbf16>, vector<32x96xbf16>, vector<8x96xf32> -> vector<8x96xf32>
    %70 = arith.truncf %67 : vector<8x32xf32> to vector<8x32xbf16>
    %cst_25 = arith.constant dense<0.000000e+00> : vector<8x96xf32>
    %71 = tpu.matmul %70, %11, %cst_25 {dimension_numbers = #tpu.dot_dimension_numbers<[1], [0], [0], [1], [0, 0, 1, 1], [], []>} : vector<8x32xbf16>, vector<32x96xbf16>, vector<8x96xf32> -> vector<8x96xf32>
    %72 = vector.extract_strided_slice %6 {offsets = [8, 0], sizes = [8, 96], strides = [1, 1]} : vector<64x96xf32> to vector<8x96xf32>
    %73 = vector.extract_strided_slice %7 {offsets = [48, 0], sizes = [8, 96], strides = [1, 1]} : vector<64x96xf32> to vector<8x96xf32>
    %74 = vector.extract_strided_slice %72 {offsets = [0, 0], sizes = [8, 64], strides = [1, 1]} : vector<8x96xf32> to vector<8x64xf32>
    %75 = vector.extract_strided_slice %69 {offsets = [0, 0], sizes = [8, 64], strides = [1, 1]} : vector<8x96xf32> to vector<8x64xf32>
    %76 = arith.addf %74, %75 : vector<8x64xf32>
    %77 = arith.negf %76 : vector<8x64xf32>
    %78 = math.exp %77 : vector<8x64xf32>
    %cst_26 = arith.constant 1.000000e+00 : f32
    %79 = vector.broadcast %cst_26 : f32 to vector<8x64xf32>
    %80 = arith.addf %79, %78 : vector<8x64xf32>
    %81 = arith.divf %79, %80 : vector<8x64xf32>
    %82 = vector.extract_strided_slice %72 {offsets = [0, 64], sizes = [8, 32], strides = [1, 1]} : vector<8x96xf32> to vector<8x32xf32>
    %83 = vector.extract_strided_slice %81 {offsets = [0, 0], sizes = [8, 32], strides = [1, 1]} : vector<8x64xf32> to vector<8x32xf32>
    %84 = vector.extract_strided_slice %69 {offsets = [0, 64], sizes = [8, 32], strides = [1, 1]} : vector<8x96xf32> to vector<8x32xf32>
    %85 = vector.broadcast %13 : vector<1x32xf32> to vector<8x32xf32>
    %86 = arith.addf %84, %85 : vector<8x32xf32>
    %87 = arith.mulf %83, %86 : vector<8x32xf32>
    %88 = arith.addf %82, %87 : vector<8x32xf32>
    %89 = math.tanh %88 : vector<8x32xf32>
    %90 = vector.extract_strided_slice %81 {offsets = [0, 32], sizes = [8, 32], strides = [1, 1]} : vector<8x64xf32> to vector<8x32xf32>
    %cst_27 = arith.constant 1.000000e+00 : f32
    %91 = vector.broadcast %cst_27 : f32 to vector<8x32xf32>
    %92 = arith.subf %91, %90 : vector<8x32xf32>
    %93 = arith.mulf %92, %89 : vector<8x32xf32>
    %94 = arith.mulf %90, %45 : vector<8x32xf32>
    %95 = arith.addf %93, %94 : vector<8x32xf32>
    %96 = vector.extract_strided_slice %73 {offsets = [0, 0], sizes = [8, 64], strides = [1, 1]} : vector<8x96xf32> to vector<8x64xf32>
    %97 = vector.extract_strided_slice %71 {offsets = [0, 0], sizes = [8, 64], strides = [1, 1]} : vector<8x96xf32> to vector<8x64xf32>
    %98 = arith.addf %96, %97 : vector<8x64xf32>
    %99 = arith.negf %98 : vector<8x64xf32>
    %100 = math.exp %99 : vector<8x64xf32>
    %cst_28 = arith.constant 1.000000e+00 : f32
    %101 = vector.broadcast %cst_28 : f32 to vector<8x64xf32>
    %102 = arith.addf %101, %100 : vector<8x64xf32>
    %103 = arith.divf %101, %102 : vector<8x64xf32>
    %104 = vector.extract_strided_slice %73 {offsets = [0, 64], sizes = [8, 32], strides = [1, 1]} : vector<8x96xf32> to vector<8x32xf32>
    %105 = vector.extract_strided_slice %103 {offsets = [0, 0], sizes = [8, 32], strides = [1, 1]} : vector<8x64xf32> to vector<8x32xf32>
    %106 = vector.extract_strided_slice %71 {offsets = [0, 64], sizes = [8, 32], strides = [1, 1]} : vector<8x96xf32> to vector<8x32xf32>
    %107 = vector.broadcast %15 : vector<1x32xf32> to vector<8x32xf32>
    %108 = arith.addf %106, %107 : vector<8x32xf32>
    %109 = arith.mulf %105, %108 : vector<8x32xf32>
    %110 = arith.addf %104, %109 : vector<8x32xf32>
    %111 = math.tanh %110 : vector<8x32xf32>
    %112 = vector.extract_strided_slice %103 {offsets = [0, 32], sizes = [8, 32], strides = [1, 1]} : vector<8x64xf32> to vector<8x32xf32>
    %cst_29 = arith.constant 1.000000e+00 : f32
    %113 = vector.broadcast %cst_29 : f32 to vector<8x32xf32>
    %114 = arith.subf %113, %112 : vector<8x32xf32>
    %115 = arith.mulf %114, %111 : vector<8x32xf32>
    %116 = arith.mulf %112, %67 : vector<8x32xf32>
    %117 = arith.addf %115, %116 : vector<8x32xf32>
    %118 = arith.truncf %95 : vector<8x32xf32> to vector<8x32xbf16>
    %cst_30 = arith.constant dense<0.000000e+00> : vector<8x96xf32>
    %119 = tpu.matmul %118, %9, %cst_30 {dimension_numbers = #tpu.dot_dimension_numbers<[1], [0], [0], [1], [0, 0, 1, 1], [], []>} : vector<8x32xbf16>, vector<32x96xbf16>, vector<8x96xf32> -> vector<8x96xf32>
    %120 = arith.truncf %117 : vector<8x32xf32> to vector<8x32xbf16>
    %cst_31 = arith.constant dense<0.000000e+00> : vector<8x96xf32>
    %121 = tpu.matmul %120, %11, %cst_31 {dimension_numbers = #tpu.dot_dimension_numbers<[1], [0], [0], [1], [0, 0, 1, 1], [], []>} : vector<8x32xbf16>, vector<32x96xbf16>, vector<8x96xf32> -> vector<8x96xf32>
    %122 = vector.extract_strided_slice %6 {offsets = [16, 0], sizes = [8, 96], strides = [1, 1]} : vector<64x96xf32> to vector<8x96xf32>
    %123 = vector.extract_strided_slice %7 {offsets = [40, 0], sizes = [8, 96], strides = [1, 1]} : vector<64x96xf32> to vector<8x96xf32>
    %124 = vector.extract_strided_slice %122 {offsets = [0, 0], sizes = [8, 64], strides = [1, 1]} : vector<8x96xf32> to vector<8x64xf32>
    %125 = vector.extract_strided_slice %119 {offsets = [0, 0], sizes = [8, 64], strides = [1, 1]} : vector<8x96xf32> to vector<8x64xf32>
    %126 = arith.addf %124, %125 : vector<8x64xf32>
    %127 = arith.negf %126 : vector<8x64xf32>
    %128 = math.exp %127 : vector<8x64xf32>
    %cst_32 = arith.constant 1.000000e+00 : f32
    %129 = vector.broadcast %cst_32 : f32 to vector<8x64xf32>
    %130 = arith.addf %129, %128 : vector<8x64xf32>
    %131 = arith.divf %129, %130 : vector<8x64xf32>
    %132 = vector.extract_strided_slice %122 {offsets = [0, 64], sizes = [8, 32], strides = [1, 1]} : vector<8x96xf32> to vector<8x32xf32>
    %133 = vector.extract_strided_slice %131 {offsets = [0, 0], sizes = [8, 32], strides = [1, 1]} : vector<8x64xf32> to vector<8x32xf32>
    %134 = vector.extract_strided_slice %119 {offsets = [0, 64], sizes = [8, 32], strides = [1, 1]} : vector<8x96xf32> to vector<8x32xf32>
    %135 = vector.broadcast %13 : vector<1x32xf32> to vector<8x32xf32>
    %136 = arith.addf %134, %135 : vector<8x32xf32>
    %137 = arith.mulf %133, %136 : vector<8x32xf32>
    %138 = arith.addf %132, %137 : vector<8x32xf32>
    %139 = math.tanh %138 : vector<8x32xf32>
    %140 = vector.extract_strided_slice %131 {offsets = [0, 32], sizes = [8, 32], strides = [1, 1]} : vector<8x64xf32> to vector<8x32xf32>
    %cst_33 = arith.constant 1.000000e+00 : f32
    %141 = vector.broadcast %cst_33 : f32 to vector<8x32xf32>
    %142 = arith.subf %141, %140 : vector<8x32xf32>
    %143 = arith.mulf %142, %139 : vector<8x32xf32>
    %144 = arith.mulf %140, %95 : vector<8x32xf32>
    %145 = arith.addf %143, %144 : vector<8x32xf32>
    %146 = vector.extract_strided_slice %123 {offsets = [0, 0], sizes = [8, 64], strides = [1, 1]} : vector<8x96xf32> to vector<8x64xf32>
    %147 = vector.extract_strided_slice %121 {offsets = [0, 0], sizes = [8, 64], strides = [1, 1]} : vector<8x96xf32> to vector<8x64xf32>
    %148 = arith.addf %146, %147 : vector<8x64xf32>
    %149 = arith.negf %148 : vector<8x64xf32>
    %150 = math.exp %149 : vector<8x64xf32>
    %cst_34 = arith.constant 1.000000e+00 : f32
    %151 = vector.broadcast %cst_34 : f32 to vector<8x64xf32>
    %152 = arith.addf %151, %150 : vector<8x64xf32>
    %153 = arith.divf %151, %152 : vector<8x64xf32>
    %154 = vector.extract_strided_slice %123 {offsets = [0, 64], sizes = [8, 32], strides = [1, 1]} : vector<8x96xf32> to vector<8x32xf32>
    %155 = vector.extract_strided_slice %153 {offsets = [0, 0], sizes = [8, 32], strides = [1, 1]} : vector<8x64xf32> to vector<8x32xf32>
    %156 = vector.extract_strided_slice %121 {offsets = [0, 64], sizes = [8, 32], strides = [1, 1]} : vector<8x96xf32> to vector<8x32xf32>
    %157 = vector.broadcast %15 : vector<1x32xf32> to vector<8x32xf32>
    %158 = arith.addf %156, %157 : vector<8x32xf32>
    %159 = arith.mulf %155, %158 : vector<8x32xf32>
    %160 = arith.addf %154, %159 : vector<8x32xf32>
    %161 = math.tanh %160 : vector<8x32xf32>
    %162 = vector.extract_strided_slice %153 {offsets = [0, 32], sizes = [8, 32], strides = [1, 1]} : vector<8x64xf32> to vector<8x32xf32>
    %cst_35 = arith.constant 1.000000e+00 : f32
    %163 = vector.broadcast %cst_35 : f32 to vector<8x32xf32>
    %164 = arith.subf %163, %162 : vector<8x32xf32>
    %165 = arith.mulf %164, %161 : vector<8x32xf32>
    %166 = arith.mulf %162, %117 : vector<8x32xf32>
    %167 = arith.addf %165, %166 : vector<8x32xf32>
    %168 = arith.truncf %145 : vector<8x32xf32> to vector<8x32xbf16>
    %cst_36 = arith.constant dense<0.000000e+00> : vector<8x96xf32>
    %169 = tpu.matmul %168, %9, %cst_36 {dimension_numbers = #tpu.dot_dimension_numbers<[1], [0], [0], [1], [0, 0, 1, 1], [], []>} : vector<8x32xbf16>, vector<32x96xbf16>, vector<8x96xf32> -> vector<8x96xf32>
    %170 = arith.truncf %167 : vector<8x32xf32> to vector<8x32xbf16>
    %cst_37 = arith.constant dense<0.000000e+00> : vector<8x96xf32>
    %171 = tpu.matmul %170, %11, %cst_37 {dimension_numbers = #tpu.dot_dimension_numbers<[1], [0], [0], [1], [0, 0, 1, 1], [], []>} : vector<8x32xbf16>, vector<32x96xbf16>, vector<8x96xf32> -> vector<8x96xf32>
    %172 = vector.extract_strided_slice %6 {offsets = [24, 0], sizes = [8, 96], strides = [1, 1]} : vector<64x96xf32> to vector<8x96xf32>
    %173 = vector.extract_strided_slice %7 {offsets = [32, 0], sizes = [8, 96], strides = [1, 1]} : vector<64x96xf32> to vector<8x96xf32>
    %174 = vector.extract_strided_slice %172 {offsets = [0, 0], sizes = [8, 64], strides = [1, 1]} : vector<8x96xf32> to vector<8x64xf32>
    %175 = vector.extract_strided_slice %169 {offsets = [0, 0], sizes = [8, 64], strides = [1, 1]} : vector<8x96xf32> to vector<8x64xf32>
    %176 = arith.addf %174, %175 : vector<8x64xf32>
    %177 = arith.negf %176 : vector<8x64xf32>
    %178 = math.exp %177 : vector<8x64xf32>
    %cst_38 = arith.constant 1.000000e+00 : f32
    %179 = vector.broadcast %cst_38 : f32 to vector<8x64xf32>
    %180 = arith.addf %179, %178 : vector<8x64xf32>
    %181 = arith.divf %179, %180 : vector<8x64xf32>
    %182 = vector.extract_strided_slice %172 {offsets = [0, 64], sizes = [8, 32], strides = [1, 1]} : vector<8x96xf32> to vector<8x32xf32>
    %183 = vector.extract_strided_slice %181 {offsets = [0, 0], sizes = [8, 32], strides = [1, 1]} : vector<8x64xf32> to vector<8x32xf32>
    %184 = vector.extract_strided_slice %169 {offsets = [0, 64], sizes = [8, 32], strides = [1, 1]} : vector<8x96xf32> to vector<8x32xf32>
    %185 = vector.broadcast %13 : vector<1x32xf32> to vector<8x32xf32>
    %186 = arith.addf %184, %185 : vector<8x32xf32>
    %187 = arith.mulf %183, %186 : vector<8x32xf32>
    %188 = arith.addf %182, %187 : vector<8x32xf32>
    %189 = math.tanh %188 : vector<8x32xf32>
    %190 = vector.extract_strided_slice %181 {offsets = [0, 32], sizes = [8, 32], strides = [1, 1]} : vector<8x64xf32> to vector<8x32xf32>
    %cst_39 = arith.constant 1.000000e+00 : f32
    %191 = vector.broadcast %cst_39 : f32 to vector<8x32xf32>
    %192 = arith.subf %191, %190 : vector<8x32xf32>
    %193 = arith.mulf %192, %189 : vector<8x32xf32>
    %194 = arith.mulf %190, %145 : vector<8x32xf32>
    %195 = arith.addf %193, %194 : vector<8x32xf32>
    %196 = vector.extract_strided_slice %173 {offsets = [0, 0], sizes = [8, 64], strides = [1, 1]} : vector<8x96xf32> to vector<8x64xf32>
    %197 = vector.extract_strided_slice %171 {offsets = [0, 0], sizes = [8, 64], strides = [1, 1]} : vector<8x96xf32> to vector<8x64xf32>
    %198 = arith.addf %196, %197 : vector<8x64xf32>
    %199 = arith.negf %198 : vector<8x64xf32>
    %200 = math.exp %199 : vector<8x64xf32>
    %cst_40 = arith.constant 1.000000e+00 : f32
    %201 = vector.broadcast %cst_40 : f32 to vector<8x64xf32>
    %202 = arith.addf %201, %200 : vector<8x64xf32>
    %203 = arith.divf %201, %202 : vector<8x64xf32>
    %204 = vector.extract_strided_slice %173 {offsets = [0, 64], sizes = [8, 32], strides = [1, 1]} : vector<8x96xf32> to vector<8x32xf32>
    %205 = vector.extract_strided_slice %203 {offsets = [0, 0], sizes = [8, 32], strides = [1, 1]} : vector<8x64xf32> to vector<8x32xf32>
    %206 = vector.extract_strided_slice %171 {offsets = [0, 64], sizes = [8, 32], strides = [1, 1]} : vector<8x96xf32> to vector<8x32xf32>
    %207 = vector.broadcast %15 : vector<1x32xf32> to vector<8x32xf32>
    %208 = arith.addf %206, %207 : vector<8x32xf32>
    %209 = arith.mulf %205, %208 : vector<8x32xf32>
    %210 = arith.addf %204, %209 : vector<8x32xf32>
    %211 = math.tanh %210 : vector<8x32xf32>
    %212 = vector.extract_strided_slice %203 {offsets = [0, 32], sizes = [8, 32], strides = [1, 1]} : vector<8x64xf32> to vector<8x32xf32>
    %cst_41 = arith.constant 1.000000e+00 : f32
    %213 = vector.broadcast %cst_41 : f32 to vector<8x32xf32>
    %214 = arith.subf %213, %212 : vector<8x32xf32>
    %215 = arith.mulf %214, %211 : vector<8x32xf32>
    %216 = arith.mulf %212, %167 : vector<8x32xf32>
    %217 = arith.addf %215, %216 : vector<8x32xf32>
    %218 = arith.truncf %195 : vector<8x32xf32> to vector<8x32xbf16>
    %cst_42 = arith.constant dense<0.000000e+00> : vector<8x96xf32>
    %219 = tpu.matmul %218, %9, %cst_42 {dimension_numbers = #tpu.dot_dimension_numbers<[1], [0], [0], [1], [0, 0, 1, 1], [], []>} : vector<8x32xbf16>, vector<32x96xbf16>, vector<8x96xf32> -> vector<8x96xf32>
    %220 = arith.truncf %217 : vector<8x32xf32> to vector<8x32xbf16>
    %cst_43 = arith.constant dense<0.000000e+00> : vector<8x96xf32>
    %221 = tpu.matmul %220, %11, %cst_43 {dimension_numbers = #tpu.dot_dimension_numbers<[1], [0], [0], [1], [0, 0, 1, 1], [], []>} : vector<8x32xbf16>, vector<32x96xbf16>, vector<8x96xf32> -> vector<8x96xf32>
    %222 = vector.extract_strided_slice %6 {offsets = [32, 0], sizes = [8, 96], strides = [1, 1]} : vector<64x96xf32> to vector<8x96xf32>
    %223 = vector.extract_strided_slice %7 {offsets = [24, 0], sizes = [8, 96], strides = [1, 1]} : vector<64x96xf32> to vector<8x96xf32>
    %224 = vector.extract_strided_slice %222 {offsets = [0, 0], sizes = [8, 64], strides = [1, 1]} : vector<8x96xf32> to vector<8x64xf32>
    %225 = vector.extract_strided_slice %219 {offsets = [0, 0], sizes = [8, 64], strides = [1, 1]} : vector<8x96xf32> to vector<8x64xf32>
    %226 = arith.addf %224, %225 : vector<8x64xf32>
    %227 = arith.negf %226 : vector<8x64xf32>
    %228 = math.exp %227 : vector<8x64xf32>
    %cst_44 = arith.constant 1.000000e+00 : f32
    %229 = vector.broadcast %cst_44 : f32 to vector<8x64xf32>
    %230 = arith.addf %229, %228 : vector<8x64xf32>
    %231 = arith.divf %229, %230 : vector<8x64xf32>
    %232 = vector.extract_strided_slice %222 {offsets = [0, 64], sizes = [8, 32], strides = [1, 1]} : vector<8x96xf32> to vector<8x32xf32>
    %233 = vector.extract_strided_slice %231 {offsets = [0, 0], sizes = [8, 32], strides = [1, 1]} : vector<8x64xf32> to vector<8x32xf32>
    %234 = vector.extract_strided_slice %219 {offsets = [0, 64], sizes = [8, 32], strides = [1, 1]} : vector<8x96xf32> to vector<8x32xf32>
    %235 = vector.broadcast %13 : vector<1x32xf32> to vector<8x32xf32>
    %236 = arith.addf %234, %235 : vector<8x32xf32>
    %237 = arith.mulf %233, %236 : vector<8x32xf32>
    %238 = arith.addf %232, %237 : vector<8x32xf32>
    %239 = math.tanh %238 : vector<8x32xf32>
    %240 = vector.extract_strided_slice %231 {offsets = [0, 32], sizes = [8, 32], strides = [1, 1]} : vector<8x64xf32> to vector<8x32xf32>
    %cst_45 = arith.constant 1.000000e+00 : f32
    %241 = vector.broadcast %cst_45 : f32 to vector<8x32xf32>
    %242 = arith.subf %241, %240 : vector<8x32xf32>
    %243 = arith.mulf %242, %239 : vector<8x32xf32>
    %244 = arith.mulf %240, %195 : vector<8x32xf32>
    %245 = arith.addf %243, %244 : vector<8x32xf32>
    %246 = vector.extract_strided_slice %223 {offsets = [0, 0], sizes = [8, 64], strides = [1, 1]} : vector<8x96xf32> to vector<8x64xf32>
    %247 = vector.extract_strided_slice %221 {offsets = [0, 0], sizes = [8, 64], strides = [1, 1]} : vector<8x96xf32> to vector<8x64xf32>
    %248 = arith.addf %246, %247 : vector<8x64xf32>
    %249 = arith.negf %248 : vector<8x64xf32>
    %250 = math.exp %249 : vector<8x64xf32>
    %cst_46 = arith.constant 1.000000e+00 : f32
    %251 = vector.broadcast %cst_46 : f32 to vector<8x64xf32>
    %252 = arith.addf %251, %250 : vector<8x64xf32>
    %253 = arith.divf %251, %252 : vector<8x64xf32>
    %254 = vector.extract_strided_slice %223 {offsets = [0, 64], sizes = [8, 32], strides = [1, 1]} : vector<8x96xf32> to vector<8x32xf32>
    %255 = vector.extract_strided_slice %253 {offsets = [0, 0], sizes = [8, 32], strides = [1, 1]} : vector<8x64xf32> to vector<8x32xf32>
    %256 = vector.extract_strided_slice %221 {offsets = [0, 64], sizes = [8, 32], strides = [1, 1]} : vector<8x96xf32> to vector<8x32xf32>
    %257 = vector.broadcast %15 : vector<1x32xf32> to vector<8x32xf32>
    %258 = arith.addf %256, %257 : vector<8x32xf32>
    %259 = arith.mulf %255, %258 : vector<8x32xf32>
    %260 = arith.addf %254, %259 : vector<8x32xf32>
    %261 = math.tanh %260 : vector<8x32xf32>
    %262 = vector.extract_strided_slice %253 {offsets = [0, 32], sizes = [8, 32], strides = [1, 1]} : vector<8x64xf32> to vector<8x32xf32>
    %cst_47 = arith.constant 1.000000e+00 : f32
    %263 = vector.broadcast %cst_47 : f32 to vector<8x32xf32>
    %264 = arith.subf %263, %262 : vector<8x32xf32>
    %265 = arith.mulf %264, %261 : vector<8x32xf32>
    %266 = arith.mulf %262, %217 : vector<8x32xf32>
    %267 = arith.addf %265, %266 : vector<8x32xf32>
    %268 = arith.truncf %245 : vector<8x32xf32> to vector<8x32xbf16>
    %cst_48 = arith.constant dense<0.000000e+00> : vector<8x96xf32>
    %269 = tpu.matmul %268, %9, %cst_48 {dimension_numbers = #tpu.dot_dimension_numbers<[1], [0], [0], [1], [0, 0, 1, 1], [], []>} : vector<8x32xbf16>, vector<32x96xbf16>, vector<8x96xf32> -> vector<8x96xf32>
    %270 = arith.truncf %267 : vector<8x32xf32> to vector<8x32xbf16>
    %cst_49 = arith.constant dense<0.000000e+00> : vector<8x96xf32>
    %271 = tpu.matmul %270, %11, %cst_49 {dimension_numbers = #tpu.dot_dimension_numbers<[1], [0], [0], [1], [0, 0, 1, 1], [], []>} : vector<8x32xbf16>, vector<32x96xbf16>, vector<8x96xf32> -> vector<8x96xf32>
    %272 = vector.extract_strided_slice %6 {offsets = [40, 0], sizes = [8, 96], strides = [1, 1]} : vector<64x96xf32> to vector<8x96xf32>
    %273 = vector.extract_strided_slice %7 {offsets = [16, 0], sizes = [8, 96], strides = [1, 1]} : vector<64x96xf32> to vector<8x96xf32>
    %274 = vector.extract_strided_slice %272 {offsets = [0, 0], sizes = [8, 64], strides = [1, 1]} : vector<8x96xf32> to vector<8x64xf32>
    %275 = vector.extract_strided_slice %269 {offsets = [0, 0], sizes = [8, 64], strides = [1, 1]} : vector<8x96xf32> to vector<8x64xf32>
    %276 = arith.addf %274, %275 : vector<8x64xf32>
    %277 = arith.negf %276 : vector<8x64xf32>
    %278 = math.exp %277 : vector<8x64xf32>
    %cst_50 = arith.constant 1.000000e+00 : f32
    %279 = vector.broadcast %cst_50 : f32 to vector<8x64xf32>
    %280 = arith.addf %279, %278 : vector<8x64xf32>
    %281 = arith.divf %279, %280 : vector<8x64xf32>
    %282 = vector.extract_strided_slice %272 {offsets = [0, 64], sizes = [8, 32], strides = [1, 1]} : vector<8x96xf32> to vector<8x32xf32>
    %283 = vector.extract_strided_slice %281 {offsets = [0, 0], sizes = [8, 32], strides = [1, 1]} : vector<8x64xf32> to vector<8x32xf32>
    %284 = vector.extract_strided_slice %269 {offsets = [0, 64], sizes = [8, 32], strides = [1, 1]} : vector<8x96xf32> to vector<8x32xf32>
    %285 = vector.broadcast %13 : vector<1x32xf32> to vector<8x32xf32>
    %286 = arith.addf %284, %285 : vector<8x32xf32>
    %287 = arith.mulf %283, %286 : vector<8x32xf32>
    %288 = arith.addf %282, %287 : vector<8x32xf32>
    %289 = math.tanh %288 : vector<8x32xf32>
    %290 = vector.extract_strided_slice %281 {offsets = [0, 32], sizes = [8, 32], strides = [1, 1]} : vector<8x64xf32> to vector<8x32xf32>
    %cst_51 = arith.constant 1.000000e+00 : f32
    %291 = vector.broadcast %cst_51 : f32 to vector<8x32xf32>
    %292 = arith.subf %291, %290 : vector<8x32xf32>
    %293 = arith.mulf %292, %289 : vector<8x32xf32>
    %294 = arith.mulf %290, %245 : vector<8x32xf32>
    %295 = arith.addf %293, %294 : vector<8x32xf32>
    %296 = vector.extract_strided_slice %273 {offsets = [0, 0], sizes = [8, 64], strides = [1, 1]} : vector<8x96xf32> to vector<8x64xf32>
    %297 = vector.extract_strided_slice %271 {offsets = [0, 0], sizes = [8, 64], strides = [1, 1]} : vector<8x96xf32> to vector<8x64xf32>
    %298 = arith.addf %296, %297 : vector<8x64xf32>
    %299 = arith.negf %298 : vector<8x64xf32>
    %300 = math.exp %299 : vector<8x64xf32>
    %cst_52 = arith.constant 1.000000e+00 : f32
    %301 = vector.broadcast %cst_52 : f32 to vector<8x64xf32>
    %302 = arith.addf %301, %300 : vector<8x64xf32>
    %303 = arith.divf %301, %302 : vector<8x64xf32>
    %304 = vector.extract_strided_slice %273 {offsets = [0, 64], sizes = [8, 32], strides = [1, 1]} : vector<8x96xf32> to vector<8x32xf32>
    %305 = vector.extract_strided_slice %303 {offsets = [0, 0], sizes = [8, 32], strides = [1, 1]} : vector<8x64xf32> to vector<8x32xf32>
    %306 = vector.extract_strided_slice %271 {offsets = [0, 64], sizes = [8, 32], strides = [1, 1]} : vector<8x96xf32> to vector<8x32xf32>
    %307 = vector.broadcast %15 : vector<1x32xf32> to vector<8x32xf32>
    %308 = arith.addf %306, %307 : vector<8x32xf32>
    %309 = arith.mulf %305, %308 : vector<8x32xf32>
    %310 = arith.addf %304, %309 : vector<8x32xf32>
    %311 = math.tanh %310 : vector<8x32xf32>
    %312 = vector.extract_strided_slice %303 {offsets = [0, 32], sizes = [8, 32], strides = [1, 1]} : vector<8x64xf32> to vector<8x32xf32>
    %cst_53 = arith.constant 1.000000e+00 : f32
    %313 = vector.broadcast %cst_53 : f32 to vector<8x32xf32>
    %314 = arith.subf %313, %312 : vector<8x32xf32>
    %315 = arith.mulf %314, %311 : vector<8x32xf32>
    %316 = arith.mulf %312, %267 : vector<8x32xf32>
    %317 = arith.addf %315, %316 : vector<8x32xf32>
    %318 = arith.truncf %295 : vector<8x32xf32> to vector<8x32xbf16>
    %cst_54 = arith.constant dense<0.000000e+00> : vector<8x96xf32>
    %319 = tpu.matmul %318, %9, %cst_54 {dimension_numbers = #tpu.dot_dimension_numbers<[1], [0], [0], [1], [0, 0, 1, 1], [], []>} : vector<8x32xbf16>, vector<32x96xbf16>, vector<8x96xf32> -> vector<8x96xf32>
    %320 = arith.truncf %317 : vector<8x32xf32> to vector<8x32xbf16>
    %cst_55 = arith.constant dense<0.000000e+00> : vector<8x96xf32>
    %321 = tpu.matmul %320, %11, %cst_55 {dimension_numbers = #tpu.dot_dimension_numbers<[1], [0], [0], [1], [0, 0, 1, 1], [], []>} : vector<8x32xbf16>, vector<32x96xbf16>, vector<8x96xf32> -> vector<8x96xf32>
    %322 = vector.extract_strided_slice %6 {offsets = [48, 0], sizes = [8, 96], strides = [1, 1]} : vector<64x96xf32> to vector<8x96xf32>
    %323 = vector.extract_strided_slice %7 {offsets = [8, 0], sizes = [8, 96], strides = [1, 1]} : vector<64x96xf32> to vector<8x96xf32>
    %324 = vector.extract_strided_slice %322 {offsets = [0, 0], sizes = [8, 64], strides = [1, 1]} : vector<8x96xf32> to vector<8x64xf32>
    %325 = vector.extract_strided_slice %319 {offsets = [0, 0], sizes = [8, 64], strides = [1, 1]} : vector<8x96xf32> to vector<8x64xf32>
    %326 = arith.addf %324, %325 : vector<8x64xf32>
    %327 = arith.negf %326 : vector<8x64xf32>
    %328 = math.exp %327 : vector<8x64xf32>
    %cst_56 = arith.constant 1.000000e+00 : f32
    %329 = vector.broadcast %cst_56 : f32 to vector<8x64xf32>
    %330 = arith.addf %329, %328 : vector<8x64xf32>
    %331 = arith.divf %329, %330 : vector<8x64xf32>
    %332 = vector.extract_strided_slice %322 {offsets = [0, 64], sizes = [8, 32], strides = [1, 1]} : vector<8x96xf32> to vector<8x32xf32>
    %333 = vector.extract_strided_slice %331 {offsets = [0, 0], sizes = [8, 32], strides = [1, 1]} : vector<8x64xf32> to vector<8x32xf32>
    %334 = vector.extract_strided_slice %319 {offsets = [0, 64], sizes = [8, 32], strides = [1, 1]} : vector<8x96xf32> to vector<8x32xf32>
    %335 = vector.broadcast %13 : vector<1x32xf32> to vector<8x32xf32>
    %336 = arith.addf %334, %335 : vector<8x32xf32>
    %337 = arith.mulf %333, %336 : vector<8x32xf32>
    %338 = arith.addf %332, %337 : vector<8x32xf32>
    %339 = math.tanh %338 : vector<8x32xf32>
    %340 = vector.extract_strided_slice %331 {offsets = [0, 32], sizes = [8, 32], strides = [1, 1]} : vector<8x64xf32> to vector<8x32xf32>
    %cst_57 = arith.constant 1.000000e+00 : f32
    %341 = vector.broadcast %cst_57 : f32 to vector<8x32xf32>
    %342 = arith.subf %341, %340 : vector<8x32xf32>
    %343 = arith.mulf %342, %339 : vector<8x32xf32>
    %344 = arith.mulf %340, %295 : vector<8x32xf32>
    %345 = arith.addf %343, %344 : vector<8x32xf32>
    %346 = vector.extract_strided_slice %323 {offsets = [0, 0], sizes = [8, 64], strides = [1, 1]} : vector<8x96xf32> to vector<8x64xf32>
    %347 = vector.extract_strided_slice %321 {offsets = [0, 0], sizes = [8, 64], strides = [1, 1]} : vector<8x96xf32> to vector<8x64xf32>
    %348 = arith.addf %346, %347 : vector<8x64xf32>
    %349 = arith.negf %348 : vector<8x64xf32>
    %350 = math.exp %349 : vector<8x64xf32>
    %cst_58 = arith.constant 1.000000e+00 : f32
    %351 = vector.broadcast %cst_58 : f32 to vector<8x64xf32>
    %352 = arith.addf %351, %350 : vector<8x64xf32>
    %353 = arith.divf %351, %352 : vector<8x64xf32>
    %354 = vector.extract_strided_slice %323 {offsets = [0, 64], sizes = [8, 32], strides = [1, 1]} : vector<8x96xf32> to vector<8x32xf32>
    %355 = vector.extract_strided_slice %353 {offsets = [0, 0], sizes = [8, 32], strides = [1, 1]} : vector<8x64xf32> to vector<8x32xf32>
    %356 = vector.extract_strided_slice %321 {offsets = [0, 64], sizes = [8, 32], strides = [1, 1]} : vector<8x96xf32> to vector<8x32xf32>
    %357 = vector.broadcast %15 : vector<1x32xf32> to vector<8x32xf32>
    %358 = arith.addf %356, %357 : vector<8x32xf32>
    %359 = arith.mulf %355, %358 : vector<8x32xf32>
    %360 = arith.addf %354, %359 : vector<8x32xf32>
    %361 = math.tanh %360 : vector<8x32xf32>
    %362 = vector.extract_strided_slice %353 {offsets = [0, 32], sizes = [8, 32], strides = [1, 1]} : vector<8x64xf32> to vector<8x32xf32>
    %cst_59 = arith.constant 1.000000e+00 : f32
    %363 = vector.broadcast %cst_59 : f32 to vector<8x32xf32>
    %364 = arith.subf %363, %362 : vector<8x32xf32>
    %365 = arith.mulf %364, %361 : vector<8x32xf32>
    %366 = arith.mulf %362, %317 : vector<8x32xf32>
    %367 = arith.addf %365, %366 : vector<8x32xf32>
    %368 = arith.truncf %345 : vector<8x32xf32> to vector<8x32xbf16>
    %cst_60 = arith.constant dense<0.000000e+00> : vector<8x96xf32>
    %369 = tpu.matmul %368, %9, %cst_60 {dimension_numbers = #tpu.dot_dimension_numbers<[1], [0], [0], [1], [0, 0, 1, 1], [], []>} : vector<8x32xbf16>, vector<32x96xbf16>, vector<8x96xf32> -> vector<8x96xf32>
    %370 = arith.truncf %367 : vector<8x32xf32> to vector<8x32xbf16>
    %cst_61 = arith.constant dense<0.000000e+00> : vector<8x96xf32>
    %371 = tpu.matmul %370, %11, %cst_61 {dimension_numbers = #tpu.dot_dimension_numbers<[1], [0], [0], [1], [0, 0, 1, 1], [], []>} : vector<8x32xbf16>, vector<32x96xbf16>, vector<8x96xf32> -> vector<8x96xf32>
    %372 = vector.extract_strided_slice %6 {offsets = [56, 0], sizes = [8, 96], strides = [1, 1]} : vector<64x96xf32> to vector<8x96xf32>
    %373 = vector.extract_strided_slice %7 {offsets = [0, 0], sizes = [8, 96], strides = [1, 1]} : vector<64x96xf32> to vector<8x96xf32>
    %374 = vector.extract_strided_slice %372 {offsets = [0, 0], sizes = [8, 64], strides = [1, 1]} : vector<8x96xf32> to vector<8x64xf32>
    %375 = vector.extract_strided_slice %369 {offsets = [0, 0], sizes = [8, 64], strides = [1, 1]} : vector<8x96xf32> to vector<8x64xf32>
    %376 = arith.addf %374, %375 : vector<8x64xf32>
    %377 = arith.negf %376 : vector<8x64xf32>
    %378 = math.exp %377 : vector<8x64xf32>
    %cst_62 = arith.constant 1.000000e+00 : f32
    %379 = vector.broadcast %cst_62 : f32 to vector<8x64xf32>
    %380 = arith.addf %379, %378 : vector<8x64xf32>
    %381 = arith.divf %379, %380 : vector<8x64xf32>
    %382 = vector.extract_strided_slice %372 {offsets = [0, 64], sizes = [8, 32], strides = [1, 1]} : vector<8x96xf32> to vector<8x32xf32>
    %383 = vector.extract_strided_slice %381 {offsets = [0, 0], sizes = [8, 32], strides = [1, 1]} : vector<8x64xf32> to vector<8x32xf32>
    %384 = vector.extract_strided_slice %369 {offsets = [0, 64], sizes = [8, 32], strides = [1, 1]} : vector<8x96xf32> to vector<8x32xf32>
    %385 = vector.broadcast %13 : vector<1x32xf32> to vector<8x32xf32>
    %386 = arith.addf %384, %385 : vector<8x32xf32>
    %387 = arith.mulf %383, %386 : vector<8x32xf32>
    %388 = arith.addf %382, %387 : vector<8x32xf32>
    %389 = math.tanh %388 : vector<8x32xf32>
    %390 = vector.extract_strided_slice %381 {offsets = [0, 32], sizes = [8, 32], strides = [1, 1]} : vector<8x64xf32> to vector<8x32xf32>
    %cst_63 = arith.constant 1.000000e+00 : f32
    %391 = vector.broadcast %cst_63 : f32 to vector<8x32xf32>
    %392 = arith.subf %391, %390 : vector<8x32xf32>
    %393 = arith.mulf %392, %389 : vector<8x32xf32>
    %394 = arith.mulf %390, %345 : vector<8x32xf32>
    %395 = arith.addf %393, %394 : vector<8x32xf32>
    %396 = vector.extract_strided_slice %373 {offsets = [0, 0], sizes = [8, 64], strides = [1, 1]} : vector<8x96xf32> to vector<8x64xf32>
    %397 = vector.extract_strided_slice %371 {offsets = [0, 0], sizes = [8, 64], strides = [1, 1]} : vector<8x96xf32> to vector<8x64xf32>
    %398 = arith.addf %396, %397 : vector<8x64xf32>
    %399 = arith.negf %398 : vector<8x64xf32>
    %400 = math.exp %399 : vector<8x64xf32>
    %cst_64 = arith.constant 1.000000e+00 : f32
    %401 = vector.broadcast %cst_64 : f32 to vector<8x64xf32>
    %402 = arith.addf %401, %400 : vector<8x64xf32>
    %403 = arith.divf %401, %402 : vector<8x64xf32>
    %404 = vector.extract_strided_slice %373 {offsets = [0, 64], sizes = [8, 32], strides = [1, 1]} : vector<8x96xf32> to vector<8x32xf32>
    %405 = vector.extract_strided_slice %403 {offsets = [0, 0], sizes = [8, 32], strides = [1, 1]} : vector<8x64xf32> to vector<8x32xf32>
    %406 = vector.extract_strided_slice %371 {offsets = [0, 64], sizes = [8, 32], strides = [1, 1]} : vector<8x96xf32> to vector<8x32xf32>
    %407 = vector.broadcast %15 : vector<1x32xf32> to vector<8x32xf32>
    %408 = arith.addf %406, %407 : vector<8x32xf32>
    %409 = arith.mulf %405, %408 : vector<8x32xf32>
    %410 = arith.addf %404, %409 : vector<8x32xf32>
    %411 = math.tanh %410 : vector<8x32xf32>
    %412 = vector.extract_strided_slice %403 {offsets = [0, 32], sizes = [8, 32], strides = [1, 1]} : vector<8x64xf32> to vector<8x32xf32>
    %cst_65 = arith.constant 1.000000e+00 : f32
    %413 = vector.broadcast %cst_65 : f32 to vector<8x32xf32>
    %414 = arith.subf %413, %412 : vector<8x32xf32>
    %415 = arith.mulf %414, %411 : vector<8x32xf32>
    %416 = arith.mulf %412, %367 : vector<8x32xf32>
    %417 = arith.addf %415, %416 : vector<8x32xf32>
    %418 = vector.extract_strided_slice %395 {offsets = [0, 0], sizes = [2, 32], strides = [1, 1]} : vector<8x32xf32> to vector<2x32xf32>
    %419 = vector.extract_strided_slice %417 {offsets = [0, 0], sizes = [2, 32], strides = [1, 1]} : vector<8x32xf32> to vector<2x32xf32>
    %420 = vector.extract_strided_slice %395 {offsets = [2, 0], sizes = [2, 32], strides = [1, 1]} : vector<8x32xf32> to vector<2x32xf32>
    %421 = vector.extract_strided_slice %417 {offsets = [2, 0], sizes = [2, 32], strides = [1, 1]} : vector<8x32xf32> to vector<2x32xf32>
    %422 = tpu.concatenate %418, %419, %420, %421 in 1 : vector<2x32xf32>, vector<2x32xf32>, vector<2x32xf32>, vector<2x32xf32> -> vector<2x128xf32>
    %423 = arith.truncf %422 : vector<2x128xf32> to vector<2x128xbf16>
    %c0_66 = arith.constant 0 : index
    %c0_67 = arith.constant 0 : index
    %424 = vector.load %arg5[%c0_66, %c0_67] : memref<128x32xbf16, #tpu.memory_space<vmem>>, vector<128x32xbf16>
    %cst_68 = arith.constant dense<0.000000e+00> : vector<2x32xf32>
    %425 = tpu.matmul %423, %424, %cst_68 {dimension_numbers = #tpu.dot_dimension_numbers<[1], [0], [0], [1], [0, 0, 1, 1], [], []>} : vector<2x128xbf16>, vector<128x32xbf16>, vector<2x32xf32> -> vector<2x32xf32>
    %c0_69 = arith.constant 0 : index
    %c0_70 = arith.constant 0 : index
    %426 = vector.load %arg6[%c0_69, %c0_70] : memref<1x32xf32, #tpu.memory_space<vmem>>, vector<1x32xf32>
    %427 = vector.broadcast %426 : vector<1x32xf32> to vector<2x32xf32>
    %428 = arith.addf %425, %427 : vector<2x32xf32>
    %cst_71 = arith.constant 0.000000e+00 : f32
    %429 = vector.broadcast %cst_71 : f32 to vector<2x32xf32>
    %430 = arith.maximumf %428, %429 : vector<2x32xf32>
    %431 = arith.truncf %430 : vector<2x32xf32> to vector<2x32xbf16>
    %c0_72 = arith.constant 0 : index
    %c0_73 = arith.constant 0 : index
    %432 = vector.load %arg7[%c0_72, %c0_73] : memref<32x128xbf16, #tpu.memory_space<vmem>>, vector<32x128xbf16>
    %cst_74 = arith.constant dense<0.000000e+00> : vector<2x128xf32>
    %433 = tpu.matmul %431, %432, %cst_74 {dimension_numbers = #tpu.dot_dimension_numbers<[1], [0], [0], [1], [0, 0, 1, 1], [], []>} : vector<2x32xbf16>, vector<32x128xbf16>, vector<2x128xf32> -> vector<2x128xf32>
    %c0_75 = arith.constant 0 : index
    %c0_76 = arith.constant 0 : index
    %434 = vector.load %arg8[%c0_75, %c0_76] : memref<1x128xf32, #tpu.memory_space<vmem>>, vector<1x128xf32>
    %435 = vector.broadcast %434 : vector<1x128xf32> to vector<2x128xf32>
    %436 = arith.addf %433, %435 : vector<2x128xf32>
    %c0_77 = arith.constant 0 : index
    %c0_78 = arith.constant 0 : index
    %437 = vector.load %arg9[%c0_77, %c0_78] : memref<2x128xf32, #tpu.memory_space<vmem>>, vector<2x128xf32>
    tpu.vector_store %arg9[%c0_77, %c0_78], %436 {strides = array<i32>} : memref<2x128xf32, #tpu.memory_space<vmem>>, vector<2x128xf32>,
    return
  }
}

</mosaic_0001>

<bundles_post_ra>
// kernel: tpu_custom_call.1
= control target key start
LH: loop header
LB: loop body
LE: loop exit
PB: predicated region body
PF: predicated region fallthrough
CT: control target
= control target key end

     0   :  { %v2060_v2 = vmov 0   ;;  %vm98_vm0 = vcmask 261120   ;;  %v2061_v8 = vmov 0.0   ;;  %s2062_s26 = smov 64   ;;  %vm2063_vm1 = vmmov 0   ;;  %s2568_s0 = inlined_call_operand.vmem [shape: bf16[64,32], index: 0, kind: input, shape index: {}]   ;;  %s2569_s1 = inlined_call_operand.vmem [shape: bf16[32,256], index: 1, kind: input, shape index: {}]   ;;  %s2570_s2 = inlined_call_operand.vmem [shape: f32[1,256], index: 2, kind: input, shape index: {}]   ;;  %s2571_s3 = inlined_call_operand.vmem [shape: bf16[2,32,96], index: 3, kind: input, shape index: {}]   ;;  %s2572_s4 = inlined_call_operand.vmem [shape: f32[2,1,32], index: 4, kind: input, shape index: {}]   ;;  %s2573_s5 = inlined_call_operand.vmem [shape: bf16[128,32], index: 5, kind: input, shape index: {}]   ;;  %s2574_s6 = inlined_call_operand.vmem [shape: f32[1,32], index: 6, kind: input, shape index: {}]   ;;  %s2575_s7 = inlined_call_operand.vmem [shape: bf16[32,128], index: 7, kind: input, shape index: {}]   ;;  %s2576_s8 = inlined_call_operand.vmem [shape: f32[1,128], index: 8, kind: input, shape index: {}]   ;;  %s2577_s9 = inlined_call_operand.hbm [shape: f32[2,128], index: 9, kind: output, shape index: {}]  }
   0x1   :  { %v1915_v0 = vld [vmem:[%s2569_s1 + $0x4] ss:$8 sps:$4 sm:$0xff]   ;;  %v1917_v1 = vld [vmem:[%s2569_s1] ss:$8 sps:$4 sm:$0xff]   ;;  %173 = vmatprep.mubr.bf16.mxu1 %v2060_v2  ;;  %143 = vmatprep.mubr.bf16.mxu0 %v2060_v2  ;;  %v1918_v3 = vld [vmem:[%s2569_s1 + $0x14] ss:$8 sps:$4 sm:$0xff]  }
   0x2   :  { %1904 = vmatprep.subr.bf16.mxu1 %v1915_v0  ;;  %111 = vmatprep.subr.bf16.mxu0 %v1915_v0  ;;  %v1920_v4 = vld [vmem:[%s2569_s1 + $0x10] ss:$8 sps:$4 sm:$0xff]   ;;  %v1924_v6 = vld [vmem:[%s2568_s0] sm:$0xff]   ;;  %v2150_v10 = vld [vmem:[%s2571_s3 + $0x8] sm:$0xff]  }
   0x3   :  { %1906 = vmatpush1.bf16.msra.mxu1 %v1917_v1  ;;  %112 = vmatpush1.bf16.msra.mxu0 %v1917_v1  ;;  %v1921_v5 = vld [vmem:[%s2568_s0 + $0x18] sm:$0xff]   ;;  %v2140_v7 = vld [vmem:[%s2571_s3] sm:$0xff]   ;;  %v2166_v12 = vld [vmem:[%s2571_s3 + $0x10] sm:$0xff]  }
   0x4   :  { %1905 = vmatprep.subr.bf16.mxu1 %v1918_v3  ;;  %113 = vmatprep.subr.bf16.mxu0 %v1918_v3  ;;  %v1644_v9 = vld [vmem:[%s2572_s4] ss:$0 sm:$0xff]  ;;  %v1646_v11 = vld [vmem:[%s2572_s4 + $0x1] ss:$0 sm:$0xff] }
   0x5   :  { %315 = vrot.lane.b32.xlu0 %v1644_v9, %s2062_s26 }
   0x7   :  { %1907 = vmatpush1.bf16.msra.mxu1 %v1920_v4  ;;  %114 = vmatpush1.bf16.msra.mxu0 %v1920_v4 }
   0x8   :  { %1748 = vmatprep.subr.bf16.mxu1 %v2061_v8  ;;  %1780 = vmatprep.subr.bf16.mxu0 %v2061_v8 }
   0x9   :  { %350 = vrot.lane.b32.xlu0 %v1646_v11, %s2062_s26 }
   0xa   :  { %1633 = vmatmul.mubr.msk.bf16.vlgmr.msra.gmra.mrb[0].mxu1 %vm98_vm0, %v1921_v5  ;;  %1630 = vmatmul.mubr.msk.bf16.vlgmr.msra.gmra.mrb[0].mxu0 %vm98_vm0, %v1924_v6 }
   0xb   :  { %1749 = vmatpush3.bf16.msra.mxu1 %v2140_v7  ;;  %1752 = vmatprep.mubr.msk.bf16.mxu1 %vm2063_vm1, %v2061_v8 }
   0xc   :  { %1750 = vmatprep.subr.bf16.mxu1 %v2061_v8  ;;  %153 = vmatprep.mubr.bf16.mxu0 %v2060_v2 }
   0xd   :  { %1781 = vmatpush3.bf16.msra.mxu0 %v2140_v7 }
   0xe   :  { %1782 = vmatprep.subr.bf16.mxu0 %v2061_v8 }
   0xf   :  { %1751 = vmatpush3.bf16.msra.mxu1 %v2150_v10 }
  0x10   :  { %1756 = vmatprep.subr.bf16.mxu1 %v2061_v8 }
  0x11   :  { %1783 = vmatpush3.bf16.msra.mxu0 %v2150_v10 }
  0x12   :  { %14 = vsyncpa [#allocation3], 0  ;;  %1753 = vmatmul.mubr.bf16.vlgmr.msra.gmra.mrb[4].mxu1 %v2060_v2  ;;  %1796 = vmatprep.subr.bf16.mxu0 %v2061_v8  ;;  %v2180_v13 = vld [vmem:[%s2571_s3 + $0x18] sm:$0xff]   ;;  %v48_v34 = vlaneseq  ;;  %v46_v37 = vld [vmem:[%s2570_s2] sm:$0x3]  ;;  %s2064_s2 = smov 96  }
  0x13   :  { %1757 = vmatpush3.bf16.msra.mxu1 %v2166_v12  ;;  %1760 = vmatprep.mubr.msk.bf16.mxu1 %vm2063_vm1, %v2061_v8  ;;  %s2065_s11 = smov 32   ;;  %vm1423_vm2 = vcmask 523264   ;;  %vm1425_vm3 = vcmask 785408  }
  0x14   :  { %1758 = vmatprep.subr.bf16.mxu1 %v2061_v8  ;;  %v49_v35 = vshrl.u32 %v48_v34, 7 }
  0x16   :  { %v50_v36 = vsub.s32 0, %v49_v35  ;;  %v54_v40 = vsub.s32 1, %v49_v35 }
  0x17   :  { %1759 = vmatpush3.bf16.msra.mxu1 %v2180_v13 }
  0x18   :  { %1764 = vmatprep.subr.bf16.mxu1 %v2061_v8  ;;  %v2217_v38 = vrot.slane %v46_v37, %v50_v36  ;;  %v2220_v42 = vrot.slane %v46_v37, %v54_v40 }
  0x1a   :  { %1761 = vmatmul.mubr.bf16.vlgmr.msra.gmra.mrb[8].mxu1 %v2060_v2 }
  0x1b   :  { %1765 = vmatpush3.bf16.msra.mxu1 %v2140_v7  ;;  %1768 = vmatprep.mubr.msk.bf16.mxu1 %vm2063_vm1, %v2061_v8 }
  0x1c   :  { %1766 = vmatprep.subr.bf16.mxu1 %v2061_v8 }
  0x1f   :  { %1767 = vmatpush3.bf16.msra.mxu1 %v2150_v10 }
  0x20   :  { %1772 = vmatprep.subr.bf16.mxu1 %v2061_v8 }
  0x77   :  { %v2206_v22 = vpop.permute.xlu0 %315 }
  0x7b   :  { %v2210_v28 = vpop.permute.xlu0 %350 }
  0xdd   :  { %v2194_v14 = vpop.f32.mrb[0].mxu1  ;;  %v145_v15 = vpop.f32.mrb[0].mxu0 }
  0xde   :  { %v2196_v16 = vpop.f32.mrb[1].mxu1  ;;  %v2198_v17 = vpop.f32.mrb[1].mxu0  ;;  %v146_v39 = vadd.f32 %v145_v15, %v2217_v38 }
  0xdf   :  { %v2200_v18 = vpop.f32.mrb[2].mxu1  ;;  %v2202_v19 = vpop.f32.mrb[2].mxu0 }
  0xe0   :  { %v181_v20 = vpop.f32.mrb[3].mxu1  ;;  %v2204_v21 = vpop.f32.mrb[3].mxu0  ;;  %v150_v37 = vadd.f32 %v2202_v19, %v2217_v38 }
  0xe1   :  { %v182_v44 = vadd.f32 %v181_v20, %v2220_v42 }
  0xe5   :  { %v245_v23 = vpop.f32.mrb[4].mxu1 }
  0xe6   :  { %v1754_v24 = vpop.f32.mrb[5].mxu1  ;;  %v318_v25 = vadd.f32 %v2206_v22, %v245_v23  ;;  %v303_v41 = vadd.f32 %v245_v23, %v146_v39 }
  0xe7   :  { %v248_v26 = vpop.f32.mrb[6].mxu1 }
  0xe8   :  { %320 = vrot.lane.b32.xlu1 %v318_v25, %s2062_s26  ;;  %v1755_v27 = vpop.f32.mrb[7].mxu1  ;;  %v1643_v43 = vmul.f32 -1.442695, %v303_v41  ;;  %v178_v41 = vadd.f32 %v2196_v16, %v2220_v42 }
  0xea   :  { %1939 = vpow2.f32 %v1643_v43 }
  0xed   :  { %v297_v29 = vpop.f32.mrb[8].mxu1 }
  0xee   :  { %v353_v30 = vadd.f32 %v2210_v28, %v297_v29  ;;  %v1762_v31 = vpop.f32.mrb[9].mxu1  ;;  %v338_v45 = vadd.f32 %v297_v29, %v182_v44 }
  0xef   :  { %v300_v32 = vpop.f32.mrb[10].mxu1 }
  0xf0   :  { %355 = vrot.lane.b32.xlu1 %v353_v30, %s2062_s26  ;;  %v1763_v33 = vpop.f32.mrb[11].mxu1  ;;  %v1645_v46 = vmul.f32 -1.442695, %v338_v45 }
  0xf2   :  { %1941 = vpow2.f32 %v1645_v46 }
  0xf4   :  { %v1940_v47 = vpop.eup %1939 }
  0xf5   :  { %v307_v48 = vadd.f32 1.0, %v1940_v47 }
  0xf7   :  { %1943 = vrcp.f32 %v307_v48 }
  0xfc   :  { %v1942_v49 = vpop.eup %1941 }
  0xfd   :  { %v342_v50 = vadd.f32 1.0, %v1942_v49 }
  0xff   :  { %1945 = vrcp.f32 %v342_v50 }
 0x101   :  { %v1944_v51 = vpop.eup %1943 }
 0x102   :  { %v330_v63 = vsub.f32 1.0, %v1944_v51  ;;  %v336_v1 = vmul.f32 0.0, %v1944_v51 }
 0x109   :  { %v1946_v54 = vpop.eup %1945 }
 0x10a   :  { %v365_v6 = vsub.f32 1.0, %v1946_v54  ;;  %v371_v11 = vmul.f32 0.0, %v1946_v54 }
 0x15a   :  { %v321_v52 = vpop.permute.xlu1 %320 }
 0x15b   :  { %v323_v53 = vmul.f32 %v1944_v51, %v321_v52 }
 0x15d   :  { %325 = vrot.lane.b32.xlu0 %v323_v53, %s2062_s26 }
 0x162   :  { %v356_v55 = vpop.permute.xlu1 %355 }
 0x163   :  { %v358_v56 = vmul.f32 %v1946_v54, %v356_v55 }
 0x165   :  { %360 = vrot.lane.b32.xlu1 %v358_v56, %s2062_s26 }
 0x1cf   :  { %v326_v57 = vpop.permute.xlu0 %325 }
 0x1d0   :  { %v328_v58 = vadd.f32 %v326_v57, %v146_v39 }
 0x1d2   :  { %1947 = vtanh.f32 %v328_v58  ;;  %v1927_v58 = vld [vmem:[%s2568_s0 + $0x8] sm:$0xff]  }
 0x1d3   :  { %1631 = vmatmul.mubr.msk.bf16.gmra.mrb[4].mxu0 %vm98_vm0, %v1927_v58 }
 0x1d4   :  { %163 = vmatprep.mubr.bf16.mxu0 %v2060_v2 }
 0x1d7   :  { %v361_v59 = vpop.permute.xlu1 %360 }
 0x1d8   :  { %v363_v60 = vadd.f32 %v361_v59, %v182_v44 }
 0x1da   :  { %1949 = vtanh.f32 %v363_v60  ;;  %v1928_v60 = vld [vmem:[%s2568_s0 + $0x10] sm:$0xff]   ;;  %s2066_s0 = smov [#allocation2]  }
 0x1db   :  { %1632 = vmatmul.mubr.msk.bf16.gmra.mrb[8].mxu0 %vm98_vm0, %v1928_v60 }
 0x1dc   :  { %v1948_v61 = vpop.eup %1947  ;;  %1784 = vmatprep.mubr.msk.bf16.mxu0 %vm2063_vm1, %v2061_v8 }
 0x1dd   :  { %332 = vrot.lane.b32.xlu0 %v1948_v61, %s2064_s2 }
 0x1e4   :  { %v1950_v62 = vpop.eup %1949 }
 0x1e5   :  { %367 = vrot.lane.b32.xlu1 %v1950_v62, %s2064_s2 }
 0x24f   :  { %v333_v0 = vpop.permute.xlu0 %332 }
 0x250   :  { %v335_v3 = vmul.f32 %v333_v0, %v330_v63 }
 0x252   :  { %v2227_v4 = vadd.f32 %v336_v1, %v335_v3 }
 0x254   :  { %v373_v5 = vpack.c.bf16 %v2227_v4, %v2227_v4 }
 0x256   :  { %375 = vrot.lane.b32.xlu0 %v373_v5, %s2064_s2 }
 0x257   :  { %v368_v9 = vpop.permute.xlu1 %367 }
 0x258   :  { %v370_v15 = vmul.f32 %v368_v9, %v365_v6 }
 0x25a   :  { %v2232_v20 = vadd.f32 %v371_v11, %v370_v15 }
 0x25c   :  { %v420_v23 = vpack.c.bf16 %v2232_v20, %v2232_v20 }
 0x25e   :  { %422 = vrot.lane.b32.xlu1 %v420_v23, %s2064_s2 }
 0x2c8   :  { %v376_v24 = vpop.permute.xlu0 %375 }
 0x2c9   :  { %1769 = vmatmul.mubr.msk.bf16.vlgmr.msra.gmra.mrb[12].mxu1 %vm98_vm0, %v376_v24 }
 0x2ca   :  { %1773 = vmatpush3.bf16.msra.mxu1 %v2166_v12  ;;  %1776 = vmatprep.mubr.msk.bf16.mxu1 %vm2063_vm1, %v2061_v8 }
 0x2cb   :  { %1774 = vmatprep.subr.bf16.mxu1 %v2061_v8 }
 0x2ce   :  { %1775 = vmatpush3.bf16.msra.mxu1 %v2180_v13 }
 0x2cf   :  { %1788 = vmatprep.subr.bf16.mxu1 %v2061_v8 }
 0x2d0   :  { %v423_v25 = vpop.permute.xlu1 %422 }
 0x2d1   :  { %1777 = vmatmul.mubr.msk.bf16.vlgmr.msra.gmra.mrb[16].mxu1 %vm98_vm0, %v423_v25 }
 0x2d2   :  { %1789 = vmatpush3.bf16.msra.mxu1 %v2166_v12  ;;  %1792 = vmatprep.mubr.msk.bf16.mxu1 %vm2063_vm1, %v2061_v8 }
 0x2d3   :  { %1790 = vmatprep.subr.bf16.mxu1 %v2061_v8 }
 0x2d6   :  { %1791 = vmatpush3.bf16.msra.mxu1 %v2180_v13 }
 0x2d7   :  { %1804 = vmatprep.subr.bf16.mxu1 %v2061_v8 }
 0x39c   :  { %v414_v26 = vpop.f32.mrb[12].mxu1 }
 0x39d   :  { %v474_v27 = vadd.f32 %v414_v26, %v2206_v22  ;;  %v1770_v29 = vpop.f32.mrb[13].mxu1  ;;  %v467_v39 = vadd.f32 %v414_v26, %v150_v37 }
 0x39e   :  { %v417_v30 = vpop.f32.mrb[14].mxu1 }
 0x39f   :  { %476 = vrot.lane.b32.xlu0 %v474_v27, %s2062_s26  ;;  %v1771_v31 = vpop.f32.mrb[15].mxu1  ;;  %v1649_v40 = vmul.f32 -1.442695, %v467_v39 }
 0x3a1   :  { %1951 = vpow2.f32 %v1649_v40 }
 0x3a4   :  { %v461_v32 = vpop.f32.mrb[16].mxu1 }
 0x3a5   :  { %v501_v33 = vadd.f32 %v461_v32, %v2210_v28  ;;  %v1778_v34 = vpop.f32.mrb[17].mxu1  ;;  %v494_v43 = vadd.f32 %v461_v32, %v178_v41 }
 0x3a6   :  { %v464_v35 = vpop.f32.mrb[18].mxu1 }
 0x3a7   :  { %503 = vrot.lane.b32.xlu1 %v501_v33, %s2062_s26  ;;  %v1779_v36 = vpop.f32.mrb[19].mxu1  ;;  %v1650_v44 = vmul.f32 -1.442695, %v494_v43 }
 0x3a9   :  { %1953 = vpow2.f32 %v1650_v44 }
 0x3ab   :  { %v1952_v45 = vpop.eup %1951 }
 0x3ac   :  { %v471_v46 = vadd.f32 1.0, %v1952_v45 }
 0x3ae   :  { %1955 = vrcp.f32 %v471_v46 }
 0x3b3   :  { %v1954_v47 = vpop.eup %1953 }
 0x3b4   :  { %v498_v48 = vadd.f32 1.0, %v1954_v47 }
 0x3b6   :  { %1957 = vrcp.f32 %v498_v48 }
 0x3b8   :  { %v1956_v49 = vpop.eup %1955 }
 0x3b9   :  { %v486_v61 = vsub.f32 1.0, %v1956_v49  ;;  %v492_v63 = vmul.f32 %v1956_v49, %v2227_v4  ;;  %v155_v4 = vpop.f32.mrb[4].mxu0 }
 0x3ba   :  { %v2286_v23 = vpop.f32.mrb[5].mxu0  ;;  %v156_v44 = vadd.f32 %v155_v4, %v2217_v38 }
 0x3bb   :  { %v2288_v24 = vpop.f32.mrb[6].mxu0 }
 0x3bc   :  { %v2290_v25 = vpop.f32.mrb[7].mxu0 }
 0x3bd   :  { %v2292_v26 = vpop.f32.mrb[8].mxu0 }
 0x3be   :  { %v2294_v27 = vpop.f32.mrb[9].mxu0 }
 0x3c0   :  { %v1958_v19 = vpop.eup %1957 }
 0x3c1   :  { %v513_v3 = vsub.f32 1.0, %v1958_v19  ;;  %v519_v6 = vmul.f32 %v1958_v19, %v2232_v20  ;;  %v2296_v20 = vpop.f32.mrb[10].mxu0 }
 0x3c2   :  { %v171_v29 = vpop.f32.mrb[11].mxu0 }
 0x3c3   :  { %v172_v47 = vadd.f32 %v171_v29, %v2220_v42 }
 0x411   :  { %v477_v50 = vpop.permute.xlu0 %476 }
 0x412   :  { %v479_v51 = vmul.f32 %v1956_v49, %v477_v50 }
 0x414   :  { %481 = vrot.lane.b32.xlu0 %v479_v51, %s2062_s26 }
 0x419   :  { %v504_v52 = vpop.permute.xlu1 %503 }
 0x41a   :  { %v506_v53 = vmul.f32 %v1958_v19, %v504_v52 }
 0x41c   :  { %508 = vrot.lane.b32.xlu1 %v506_v53, %s2062_s26 }
 0x486   :  { %v482_v16 = vpop.permute.xlu0 %481 }
 0x487   :  { %v484_v54 = vadd.f32 %v482_v16, %v150_v37 }
 0x489   :  { %1959 = vtanh.f32 %v484_v54 }
 0x48e   :  { %v509_v55 = vpop.permute.xlu1 %508 }
 0x48f   :  { %v511_v56 = vadd.f32 %v509_v55, %v178_v41 }
 0x491   :  { %1961 = vtanh.f32 %v511_v56 }
 0x493   :  { %v1960_v57 = vpop.eup %1959 }
 0x494   :  { %488 = vrot.lane.b32.xlu0 %v1960_v57, %s2064_s2 }
 0x49b   :  { %v1962_v59 = vpop.eup %1961 }
 0x49c   :  { %515 = vrot.lane.b32.xlu1 %v1962_v59, %s2064_s2 }
 0x506   :  { %v489_v62 = vpop.permute.xlu0 %488 }
 0x507   :  { %v491_v0 = vmul.f32 %v489_v62, %v486_v61 }
 0x509   :  { %v2275_v1 = vadd.f32 %v492_v63, %v491_v0 }
 0x50b   :  { %v521_v2 = vpack.c.bf16 %v2275_v1, %v2275_v1 }
 0x50d   :  { %523 = vrot.lane.b32.xlu0 %v521_v2, %s2064_s2 }
 0x50e   :  { %v516_v5 = vpop.permute.xlu1 %515 }
 0x50f   :  { %v518_v9 = vmul.f32 %v516_v5, %v513_v3 }
 0x511   :  { %v2281_v11 = vadd.f32 %v519_v6, %v518_v9 }
 0x513   :  { %v568_v15 = vpack.c.bf16 %v2281_v11, %v2281_v11 }
 0x515   :  { %570 = vrot.lane.b32.xlu1 %v568_v15, %s2064_s2 }
 0x57f   :  { %v524_v30 = vpop.permute.xlu0 %523 }
 0x580   :  { %1785 = vmatmul.mubr.msk.bf16.vlgmr.msra.gmra.mrb[12].mxu0 %vm98_vm0, %v524_v30 }
 0x581   :  { %1797 = vmatpush3.bf16.msra.mxu0 %v2140_v7  ;;  %1800 = vmatprep.mubr.msk.bf16.mxu0 %vm2063_vm1, %v2061_v8 }
 0x582   :  { %1798 = vmatprep.subr.bf16.mxu0 %v2061_v8 }
 0x585   :  { %1799 = vmatpush3.bf16.msra.mxu0 %v2150_v10 }
 0x586   :  { %1812 = vmatprep.subr.bf16.mxu0 %v2061_v8 }
 0x587   :  { %v571_v31 = vpop.permute.xlu1 %570 }
 0x588   :  { %1793 = vmatmul.mubr.msk.bf16.vlgmr.msra.gmra.mrb[20].mxu1 %vm98_vm0, %v571_v31 }
 0x589   :  { %1805 = vmatpush3.bf16.msra.mxu1 %v2166_v12  ;;  %1808 = vmatprep.mubr.msk.bf16.mxu1 %vm2063_vm1, %v2061_v8 }
 0x58a   :  { %1806 = vmatprep.subr.bf16.mxu1 %v2061_v8 }
 0x58d   :  { %1807 = vmatpush3.bf16.msra.mxu1 %v2180_v13 }
 0x58e   :  { %1820 = vmatprep.subr.bf16.mxu1 %v2061_v8 }
 0x653   :  { %v562_v32 = vpop.f32.mrb[12].mxu0 }
 0x654   :  { %v622_v33 = vadd.f32 %v562_v32, %v2206_v22  ;;  %v1786_v34 = vpop.f32.mrb[13].mxu0  ;;  %v615_v45 = vadd.f32 %v562_v32, %v156_v44 }
 0x655   :  { %v565_v35 = vpop.f32.mrb[14].mxu0 }
 0x656   :  { %624 = vrot.lane.b32.xlu0 %v622_v33, %s2062_s26  ;;  %v1787_v36 = vpop.f32.mrb[15].mxu0  ;;  %v1653_v46 = vmul.f32 -1.442695, %v615_v45  ;;  %v160_v45 = vadd.f32 %v2288_v24, %v2217_v38 }
 0x658   :  { %1963 = vpow2.f32 %v1653_v46 }
 0x65b   :  { %v609_v37 = vpop.f32.mrb[20].mxu1 }
 0x65c   :  { %v649_v39 = vadd.f32 %v609_v37, %v2210_v28  ;;  %v1794_v40 = vpop.f32.mrb[21].mxu1  ;;  %v642_v48 = vadd.f32 %v609_v37, %v172_v47 }
 0x65d   :  { %v612_v41 = vpop.f32.mrb[22].mxu1 }
 0x65e   :  { %651 = vrot.lane.b32.xlu1 %v649_v39, %s2062_s26  ;;  %v1795_v43 = vpop.f32.mrb[23].mxu1  ;;  %v1654_v49 = vmul.f32 -1.442695, %v642_v48  ;;  %v168_v48 = vadd.f32 %v2294_v27, %v2220_v42 }
 0x660   :  { %1965 = vpow2.f32 %v1654_v49 }
 0x662   :  { %v1964_v50 = vpop.eup %1963 }
 0x663   :  { %v619_v51 = vadd.f32 1.0, %v1964_v50 }
 0x665   :  { %1967 = vrcp.f32 %v619_v51 }
 0x66a   :  { %v1966_v19 = vpop.eup %1965 }
 0x66b   :  { %v646_v52 = vadd.f32 1.0, %v1966_v19 }
 0x66d   :  { %1969 = vrcp.f32 %v646_v52 }
 0x66f   :  { %v1968_v53 = vpop.eup %1967 }
 0x670   :  { %v634_v0 = vsub.f32 1.0, %v1968_v53  ;;  %v640_v3 = vmul.f32 %v1968_v53, %v2275_v1 }
 0x677   :  { %v1970_v55 = vpop.eup %1969 }
 0x678   :  { %v661_v15 = vsub.f32 1.0, %v1970_v55  ;;  %v667_v29 = vmul.f32 %v1970_v55, %v2281_v11 }
 0x6c8   :  { %v625_v16 = vpop.permute.xlu0 %624 }
 0x6c9   :  { %v627_v54 = vmul.f32 %v1968_v53, %v625_v16 }
 0x6cb   :  { %629 = vrot.lane.b32.xlu0 %v627_v54, %s2062_s26 }
 0x6d0   :  { %v652_v56 = vpop.permute.xlu1 %651 }
 0x6d1   :  { %v654_v57 = vmul.f32 %v1970_v55, %v652_v56 }
 0x6d3   :  { %656 = vrot.lane.b32.xlu1 %v654_v57, %s2062_s26 }
 0x73d   :  { %v630_v58 = vpop.permute.xlu0 %629 }
 0x73e   :  { %v632_v59 = vadd.f32 %v630_v58, %v156_v44 }
 0x740   :  { %1971 = vtanh.f32 %v632_v59 }
 0x745   :  { %v657_v60 = vpop.permute.xlu1 %656 }
 0x746   :  { %v659_v61 = vadd.f32 %v657_v60, %v172_v47 }
 0x748   :  { %1973 = vtanh.f32 %v659_v61 }
 0x74a   :  { %v1972_v62 = vpop.eup %1971 }
 0x74b   :  { %636 = vrot.lane.b32.xlu0 %v1972_v62, %s2064_s2 }
 0x752   :  { %v1974_v63 = vpop.eup %1973 }
 0x753   :  { %663 = vrot.lane.b32.xlu1 %v1974_v63, %s2064_s2 }
 0x7bd   :  { %v637_v2 = vpop.permute.xlu0 %636 }
 0x7be   :  { %v639_v5 = vmul.f32 %v637_v2, %v634_v0 }
 0x7c0   :  { %v2323_v6 = vadd.f32 %v640_v3, %v639_v5 }
 0x7c2   :  { %v669_v9 = vpack.c.bf16 %v2323_v6, %v2323_v6 }
 0x7c4   :  { %671 = vrot.lane.b32.xlu0 %v669_v9, %s2064_s2 }
 0x7c5   :  { %v664_v4 = vpop.permute.xlu1 %663 }
 0x7c6   :  { %v666_v30 = vmul.f32 %v664_v4, %v661_v15 }
 0x7c8   :  { %v2329_v31 = vadd.f32 %v667_v29, %v666_v30 }
 0x7ca   :  { %v716_v32 = vpack.c.bf16 %v2329_v31, %v2329_v31 }
 0x7cc   :  { %718 = vrot.lane.b32.xlu1 %v716_v32, %s2064_s2 }
 0x836   :  { %v672_v1 = vpop.permute.xlu0 %671 }
 0x837   :  { %1801 = vmatmul.mubr.msk.bf16.vlgmr.msra.gmra.mrb[16].mxu0 %vm98_vm0, %v672_v1 }
 0x838   :  { %1813 = vmatpush3.bf16.msra.mxu0 %v2140_v7  ;;  %1816 = vmatprep.mubr.msk.bf16.mxu0 %vm2063_vm1, %v2061_v8 }
 0x839   :  { %1814 = vmatprep.subr.bf16.mxu0 %v2061_v8 }
 0x83c   :  { %1815 = vmatpush3.bf16.msra.mxu0 %v2150_v10 }
 0x83d   :  { %1828 = vmatprep.subr.bf16.mxu0 %v2061_v8 }
 0x83e   :  { %v719_v11 = vpop.permute.xlu1 %718 }
 0x83f   :  { %1809 = vmatmul.mubr.msk.bf16.vlgmr.msra.gmra.mrb[24].mxu1 %vm98_vm0, %v719_v11 }
 0x840   :  { %1821 = vmatpush3.bf16.msra.mxu1 %v2166_v12  ;;  %1824 = vmatprep.mubr.msk.bf16.mxu1 %vm2063_vm1, %v2061_v8 }
 0x841   :  { %1822 = vmatprep.subr.bf16.mxu1 %v2061_v8 }
 0x844   :  { %1823 = vmatpush3.bf16.msra.mxu1 %v2180_v13 }
 0x845   :  { %1836 = vmatprep.subr.bf16.mxu1 %v2061_v8 }
 0x90a   :  { %v710_v33 = vpop.f32.mrb[16].mxu0 }
 0x90b   :  { %v770_v34 = vadd.f32 %v710_v33, %v2206_v22  ;;  %v1802_v35 = vpop.f32.mrb[17].mxu0  ;;  %v763_v46 = vadd.f32 %v710_v33, %v160_v45 }
 0x90c   :  { %v713_v36 = vpop.f32.mrb[18].mxu0 }
 0x90d   :  { %772 = vrot.lane.b32.xlu0 %v770_v34, %s2062_s26  ;;  %v1803_v37 = vpop.f32.mrb[19].mxu0  ;;  %v1657_v47 = vmul.f32 -1.442695, %v763_v46 }
 0x90f   :  { %1975 = vpow2.f32 %v1657_v47  ;;  %v162_v47 = vadd.f32 %v2290_v25, %v2220_v42 }
 0x912   :  { %v757_v39 = vpop.f32.mrb[24].mxu1 }
 0x913   :  { %v797_v40 = vadd.f32 %v757_v39, %v2210_v28  ;;  %v1810_v41 = vpop.f32.mrb[25].mxu1  ;;  %v790_v49 = vadd.f32 %v757_v39, %v168_v48 }
 0x914   :  { %v760_v43 = vpop.f32.mrb[26].mxu1 }
 0x915   :  { %799 = vrot.lane.b32.xlu1 %v797_v40, %s2062_s26  ;;  %v1811_v44 = vpop.f32.mrb[27].mxu1  ;;  %v1658_v50 = vmul.f32 -1.442695, %v790_v49 }
 0x916   :  { %v166_v44 = vadd.f32 %v2292_v26, %v2217_v38 }
 0x917   :  { %1977 = vpow2.f32 %v1658_v50 }
 0x919   :  { %v1976_v51 = vpop.eup %1975 }
 0x91a   :  { %v767_v19 = vadd.f32 1.0, %v1976_v51 }
 0x91c   :  { %1979 = vrcp.f32 %v767_v19 }
 0x921   :  { %v1978_v52 = vpop.eup %1977 }
 0x922   :  { %v794_v53 = vadd.f32 1.0, %v1978_v52 }
 0x924   :  { %1981 = vrcp.f32 %v794_v53 }
 0x926   :  { %v1980_v16 = vpop.eup %1979 }
 0x927   :  { %v782_v63 = vsub.f32 1.0, %v1980_v16  ;;  %v788_v2 = vmul.f32 %v1980_v16, %v2323_v6 }
 0x92e   :  { %v1982_v24 = vpop.eup %1981 }
 0x92f   :  { %v809_v15 = vsub.f32 1.0, %v1982_v24  ;;  %v815_v29 = vmul.f32 %v1982_v24, %v2329_v31 }
 0x97f   :  { %v773_v54 = vpop.permute.xlu0 %772 }
 0x980   :  { %v775_v55 = vmul.f32 %v1980_v16, %v773_v54 }
 0x982   :  { %777 = vrot.lane.b32.xlu0 %v775_v55, %s2062_s26 }
 0x987   :  { %v800_v56 = vpop.permute.xlu1 %799 }
 0x988   :  { %v802_v57 = vmul.f32 %v1982_v24, %v800_v56 }
 0x98a   :  { %804 = vrot.lane.b32.xlu1 %v802_v57, %s2062_s26 }
 0x9f4   :  { %v778_v27 = vpop.permute.xlu0 %777 }
 0x9f5   :  { %v780_v58 = vadd.f32 %v778_v27, %v160_v45 }
 0x9f7   :  { %1983 = vtanh.f32 %v780_v58 }
 0x9fc   :  { %v805_v59 = vpop.permute.xlu1 %804 }
 0x9fd   :  { %v807_v60 = vadd.f32 %v805_v59, %v168_v48 }
 0x9ff   :  { %1985 = vtanh.f32 %v807_v60 }
 0xa01   :  { %v1984_v61 = vpop.eup %1983 }
 0xa02   :  { %784 = vrot.lane.b32.xlu0 %v1984_v61, %s2064_s2 }
 0xa09   :  { %v1986_v62 = vpop.eup %1985 }
 0xa0a   :  { %811 = vrot.lane.b32.xlu1 %v1986_v62, %s2064_s2 }
 0xa74   :  { %v785_v0 = vpop.permute.xlu0 %784 }
 0xa75   :  { %v787_v3 = vmul.f32 %v785_v0, %v782_v63 }
 0xa77   :  { %v2361_v5 = vadd.f32 %v788_v2, %v787_v3 }
 0xa79   :  { %v817_v9 = vpack.c.bf16 %v2361_v5, %v2361_v5 }
 0xa7b   :  { %819 = vrot.lane.b32.xlu0 %v817_v9, %s2064_s2 }
 0xa7c   :  { %v812_v4 = vpop.permute.xlu1 %811 }
 0xa7d   :  { %v814_v30 = vmul.f32 %v812_v4, %v809_v15 }
 0xa7f   :  { %v2367_v32 = vadd.f32 %v815_v29, %v814_v30 }
 0xa81   :  { %v864_v1 = vpack.c.bf16 %v2367_v32, %v2367_v32 }
 0xa83   :  { %866 = vrot.lane.b32.xlu1 %v864_v1, %s2064_s2 }
 0xaed   :  { %v820_v6 = vpop.permute.xlu0 %819 }
 0xaee   :  { %1817 = vmatmul.mubr.msk.bf16.vlgmr.msra.gmra.mrb[20].mxu0 %vm98_vm0, %v820_v6 }
 0xaef   :  { %1829 = vmatpush3.bf16.msra.mxu0 %v2140_v7  ;;  %1832 = vmatprep.mubr.msk.bf16.mxu0 %vm2063_vm1, %v2061_v8 }
 0xaf0   :  { %1830 = vmatprep.subr.bf16.mxu0 %v2061_v8 }
 0xaf3   :  { %1831 = vmatpush3.bf16.msra.mxu0 %v2150_v10 }
 0xaf4   :  { %1844 = vmatprep.subr.bf16.mxu0 %v2061_v8 }
 0xaf5   :  { %v867_v31 = vpop.permute.xlu1 %866 }
 0xaf6   :  { %1825 = vmatmul.mubr.msk.bf16.vlgmr.msra.gmra.mrb[28].mxu1 %vm98_vm0, %v867_v31 }
 0xaf7   :  { %1837 = vmatpush3.bf16.msra.mxu1 %v2166_v12  ;;  %1840 = vmatprep.mubr.msk.bf16.mxu1 %vm2063_vm1, %v2061_v8 }
 0xaf8   :  { %1838 = vmatprep.subr.bf16.mxu1 %v2061_v8 }
 0xafb   :  { %1839 = vmatpush3.bf16.msra.mxu1 %v2180_v13 }
 0xafc   :  { %1852 = vmatprep.subr.bf16.mxu1 %v2061_v8 }
 0xbc1   :  { %v858_v11 = vpop.f32.mrb[20].mxu0 }
 0xbc2   :  { %v918_v33 = vadd.f32 %v858_v11, %v2206_v22  ;;  %v1818_v34 = vpop.f32.mrb[21].mxu0  ;;  %v911_v45 = vadd.f32 %v858_v11, %v166_v44 }
 0xbc3   :  { %v861_v35 = vpop.f32.mrb[22].mxu0 }
 0xbc4   :  { %920 = vrot.lane.b32.xlu0 %v918_v33, %s2062_s26  ;;  %v1819_v36 = vpop.f32.mrb[23].mxu0  ;;  %v1661_v46 = vmul.f32 -1.442695, %v911_v45 }
 0xbc6   :  { %1987 = vpow2.f32 %v1661_v46 }
 0xbc9   :  { %v905_v37 = vpop.f32.mrb[28].mxu1 }
 0xbca   :  { %v945_v39 = vadd.f32 %v905_v37, %v2210_v28  ;;  %v1826_v40 = vpop.f32.mrb[29].mxu1  ;;  %v938_v48 = vadd.f32 %v905_v37, %v162_v47 }
 0xbcb   :  { %v908_v41 = vpop.f32.mrb[30].mxu1 }
 0xbcc   :  { %947 = vrot.lane.b32.xlu1 %v945_v39, %s2062_s26  ;;  %v1827_v43 = vpop.f32.mrb[31].mxu1  ;;  %v1662_v49 = vmul.f32 -1.442695, %v938_v48  ;;  %v170_v39 = vadd.f32 %v2296_v20, %v2217_v38 }
 0xbcd   :  { %v158_v43 = vadd.f32 %v2286_v23, %v2220_v42 }
 0xbce   :  { %1989 = vpow2.f32 %v1662_v49 }
 0xbd0   :  { %v1988_v50 = vpop.eup %1987 }
 0xbd1   :  { %v915_v51 = vadd.f32 1.0, %v1988_v50 }
 0xbd3   :  { %1991 = vrcp.f32 %v915_v51 }
 0xbd8   :  { %v1990_v19 = vpop.eup %1989 }
 0xbd9   :  { %v942_v52 = vadd.f32 1.0, %v1990_v19 }
 0xbdb   :  { %1993 = vrcp.f32 %v942_v52 }
 0xbdd   :  { %v1992_v53 = vpop.eup %1991 }
 0xbde   :  { %v930_v60 = vsub.f32 1.0, %v1992_v53  ;;  %v936_v62 = vmul.f32 %v1992_v53, %v2361_v5 }
 0xbe5   :  { %v1994_v26 = vpop.eup %1993 }
 0xbe6   :  { %v957_v3 = vsub.f32 1.0, %v1994_v26  ;;  %v963_v15 = vmul.f32 %v1994_v26, %v2367_v32 }
 0xc36   :  { %v921_v16 = vpop.permute.xlu0 %920 }
 0xc37   :  { %v923_v54 = vmul.f32 %v1992_v53, %v921_v16 }
 0xc39   :  { %925 = vrot.lane.b32.xlu0 %v923_v54, %s2062_s26 }
 0xc3e   :  { %v948_v55 = vpop.permute.xlu1 %947 }
 0xc3f   :  { %v950_v24 = vmul.f32 %v1994_v26, %v948_v55 }
 0xc41   :  { %952 = vrot.lane.b32.xlu1 %v950_v24, %s2062_s26 }
 0xcab   :  { %v926_v25 = vpop.permute.xlu0 %925 }
 0xcac   :  { %v928_v56 = vadd.f32 %v926_v25, %v166_v44 }
 0xcae   :  { %1995 = vtanh.f32 %v928_v56 }
 0xcb3   :  { %v953_v57 = vpop.permute.xlu1 %952 }
 0xcb4   :  { %v955_v27 = vadd.f32 %v953_v57, %v162_v47 }
 0xcb6   :  { %1997 = vtanh.f32 %v955_v27 }
 0xcb8   :  { %v1996_v58 = vpop.eup %1995 }
 0xcb9   :  { %932 = vrot.lane.b32.xlu0 %v1996_v58, %s2064_s2 }
 0xcc0   :  { %v1998_v59 = vpop.eup %1997 }
 0xcc1   :  { %959 = vrot.lane.b32.xlu1 %v1998_v59, %s2064_s2 }
 0xd2b   :  { %v933_v61 = vpop.permute.xlu0 %932 }
 0xd2c   :  { %v935_v63 = vmul.f32 %v933_v61, %v930_v60 }
 0xd2e   :  { %v2399_v0 = vadd.f32 %v936_v62, %v935_v63 }
 0xd30   :  { %v965_v2 = vpack.c.bf16 %v2399_v0, %v2399_v0 }
 0xd32   :  { %967 = vrot.lane.b32.xlu0 %v965_v2, %s2064_s2 }
 0xd33   :  { %v960_v9 = vpop.permute.xlu1 %959 }
 0xd34   :  { %v962_v4 = vmul.f32 %v960_v9, %v957_v3  ;;  %v2035_v9 = vld [vmem:[%s2571_s3] sm:$0xff]  }
 0xd36   :  { %v2405_v29 = vadd.f32 %v963_v15, %v962_v4 }
 0xd38   :  { %v1012_v30 = vpack.c.bf16 %v2405_v29, %v2405_v29 }
 0xd3a   :  { %1014 = vrot.lane.b32.xlu1 %v1012_v30, %s2064_s2 }
 0xda4   :  { %v968_v5 = vpop.permute.xlu0 %967 }
 0xda5   :  { %1833 = vmatmul.mubr.msk.bf16.vlgmr.msra.gmra.mrb[24].mxu0 %vm98_vm0, %v968_v5 }
 0xda6   :  { %1845 = vmatpush3.bf16.msra.mxu0 %v2140_v7  ;;  %1848 = vmatprep.mubr.msk.bf16.mxu0 %vm2063_vm1, %v2061_v8 }
 0xda7   :  { %1846 = vmatprep.subr.bf16.mxu0 %v2061_v8 }
 0xdaa   :  { %1847 = vmatpush3.bf16.msra.mxu0 %v2150_v10 }
 0xdab   :  { %1860 = vmatprep.subr.bf16.mxu0 %v2061_v8 }
 0xdac   :  { %v1015_v32 = vpop.permute.xlu1 %1014 }
 0xdad   :  { %1841 = vmatmul.mubr.msk.bf16.vlgmr.msra.gmra.mrb[32].mxu1 %vm98_vm0, %v1015_v32 }
 0xdae   :  { %1853 = vmatpush3.bf16.msra.mxu1 %v2166_v12  ;;  %1856 = vmatprep.mubr.msk.bf16.mxu1 %vm2063_vm1, %v2061_v8 }
 0xdaf   :  { %1854 = vmatprep.subr.bf16.mxu1 %v2061_v8 }
 0xdb2   :  { %1855 = vmatpush3.bf16.msra.mxu1 %v2180_v13 }
 0xdb3   :  { %1868 = vmatprep.subr.bf16.mxu1 %v2061_v8 }
 0xe78   :  { %v1006_v7 = vpop.f32.mrb[24].mxu0 }
 0xe79   :  { %v1066_v1 = vadd.f32 %v1006_v7, %v2206_v22  ;;  %v1834_v6 = vpop.f32.mrb[25].mxu0  ;;  %v1059_v40 = vadd.f32 %v1006_v7, %v170_v39 }
 0xe7a   :  { %v1009_v31 = vpop.f32.mrb[26].mxu0 }
 0xe7b   :  { %1068 = vrot.lane.b32.xlu0 %v1066_v1, %s2062_s26  ;;  %v1835_v11 = vpop.f32.mrb[27].mxu0  ;;  %v1665_v41 = vmul.f32 -1.442695, %v1059_v40 }
 0xe7d   :  { %1999 = vpow2.f32 %v1665_v41 }
 0xe80   :  { %v1053_v33 = vpop.f32.mrb[32].mxu1 }
 0xe81   :  { %v1093_v34 = vadd.f32 %v1053_v33, %v2210_v28  ;;  %v1842_v35 = vpop.f32.mrb[33].mxu1  ;;  %v1086_v44 = vadd.f32 %v1053_v33, %v158_v43  ;;  %v152_v33 = vadd.f32 %v2204_v21, %v2220_v42 }
 0xe82   :  { %v1056_v36 = vpop.f32.mrb[34].mxu1 }
 0xe83   :  { %1095 = vrot.lane.b32.xlu1 %v1093_v34, %s2062_s26  ;;  %v1843_v37 = vpop.f32.mrb[35].mxu1  ;;  %v1666_v45 = vmul.f32 -1.442695, %v1086_v44 }
 0xe85   :  { %2001 = vpow2.f32 %v1666_v45 }
 0xe87   :  { %v2000_v46 = vpop.eup %1999 }
 0xe88   :  { %v1063_v47 = vadd.f32 1.0, %v2000_v46 }
 0xe8a   :  { %2003 = vrcp.f32 %v1063_v47 }
 0xe8f   :  { %v2002_v48 = vpop.eup %2001 }
 0xe90   :  { %v1090_v49 = vadd.f32 1.0, %v2002_v48 }
 0xe92   :  { %2005 = vrcp.f32 %v1090_v49 }
 0xe94   :  { %v2004_v50 = vpop.eup %2003 }
 0xe95   :  { %v1078_v25 = vsub.f32 1.0, %v2004_v50  ;;  %v1084_v57 = vmul.f32 %v2004_v50, %v2399_v0 }
 0xe9c   :  { %v2006_v20 = vpop.eup %2005 }
 0xe9d   :  { %v1105_v60 = vsub.f32 1.0, %v2006_v20  ;;  %v1111_v62 = vmul.f32 %v2006_v20, %v2405_v29 }
 0xeed   :  { %v1069_v51 = vpop.permute.xlu0 %1068 }
 0xeee   :  { %v1071_v19 = vmul.f32 %v2004_v50, %v1069_v51 }
 0xef0   :  { %1073 = vrot.lane.b32.xlu0 %v1071_v19, %s2062_s26 }
 0xef5   :  { %v1096_v52 = vpop.permute.xlu1 %1095 }
 0xef6   :  { %v1098_v53 = vmul.f32 %v2006_v20, %v1096_v52 }
 0xef8   :  { %1100 = vrot.lane.b32.xlu1 %v1098_v53, %s2062_s26 }
 0xf62   :  { %v1074_v23 = vpop.permute.xlu0 %1073 }
 0xf63   :  { %v1076_v16 = vadd.f32 %v1074_v23, %v170_v39 }
 0xf65   :  { %2007 = vtanh.f32 %v1076_v16 }
 0xf6a   :  { %v1101_v54 = vpop.permute.xlu1 %1100 }
 0xf6b   :  { %v1103_v26 = vadd.f32 %v1101_v54, %v158_v43 }
 0xf6d   :  { %2009 = vtanh.f32 %v1103_v26 }
 0xf6f   :  { %v2008_v55 = vpop.eup %2007 }
 0xf70   :  { %1080 = vrot.lane.b32.xlu0 %v2008_v55, %s2064_s2 }
 0xf77   :  { %v2010_v24 = vpop.eup %2009 }
 0xf78   :  { %1107 = vrot.lane.b32.xlu1 %v2010_v24, %s2064_s2 }
 0xfe2   :  { %v1081_v56 = vpop.permute.xlu0 %1080 }
 0xfe3   :  { %v1083_v27 = vmul.f32 %v1081_v56, %v1078_v25 }
 0xfe5   :  { %v2437_v58 = vadd.f32 %v1084_v57, %v1083_v27 }
 0xfe7   :  { %v1113_v59 = vpack.c.bf16 %v2437_v58, %v2437_v58 }
 0xfe9   :  { %1115 = vrot.lane.b32.xlu0 %v1113_v59, %s2064_s2 }
 0xfea   :  { %v1108_v61 = vpop.permute.xlu1 %1107 }
 0xfeb   :  { %v1110_v63 = vmul.f32 %v1108_v61, %v1105_v60 }
 0xfed   :  { %v2443_v2 = vadd.f32 %v1111_v62, %v1110_v63 }
 0xfef   :  { %v1160_v3 = vpack.c.bf16 %v2443_v2, %v2443_v2 }
 0xff1   :  { %1162 = vrot.lane.b32.xlu1 %v1160_v3, %s2064_s2 }
0x105b   :  { %v1116_v0 = vpop.permute.xlu0 %1115 }
0x105c   :  { %1849 = vmatmul.mubr.msk.bf16.vlgmr.msra.gmra.mrb[28].mxu0 %vm98_vm0, %v1116_v0 }
0x105d   :  { %1861 = vmatpush3.bf16.msra.mxu0 %v2035_v9  ;;  %1864 = vmatprep.mubr.msk.bf16.mxu0 %vm2063_vm1, %v2061_v8 }
0x105e   :  { %1862 = vmatprep.subr.bf16.mxu0 %v2061_v8 }
0x1061   :  { %1863 = vmatpush3.bf16.msra.mxu0 %v2150_v10 }
0x1062   :  { %1876 = vmatprep.subr.bf16.mxu0 %v2061_v8 }
0x1063   :  { %v1163_v15 = vpop.permute.xlu1 %1162 }
0x1064   :  { %1857 = vmatmul.mubr.msk.bf16.vlgmr.msra.gmra.mrb[36].mxu1 %vm98_vm0, %v1163_v15  ;;  %v180_v15 = vadd.f32 %v2200_v18, %v2217_v38 }
0x1065   :  { %1869 = vmatpush3.bf16.msra.mxu1 %v2166_v12  ;;  %1872 = vmatprep.mubr.msk.bf16.mxu1 %vm2063_vm1, %v2061_v8 }
0x1066   :  { %1870 = vmatprep.subr.bf16.mxu1 %v2061_v8 }
0x1069   :  { %1871 = vmatpush3.bf16.msra.mxu1 %v2180_v13  ;;  %v176_v13 = vadd.f32 %v2194_v14, %v2217_v38 }
0x106a   :  { %1896 = vmatprep.subr.bf16.mxu1 %v2061_v8 }
0x112f   :  { %v1154_v4 = vpop.f32.mrb[28].mxu0 }
0x1130   :  { %v1214_v29 = vadd.f32 %v1154_v4, %v2206_v22  ;;  %v1850_v10 = vpop.f32.mrb[29].mxu0  ;;  %v1207_v31 = vadd.f32 %v1154_v4, %v176_v13 }
0x1131   :  { %v1157_v30 = vpop.f32.mrb[30].mxu0 }
0x1132   :  { %1216 = vrot.lane.b32.xlu0 %v1214_v29, %s2062_s26  ;;  %v1851_v5 = vpop.f32.mrb[31].mxu0  ;;  %v1669_v11 = vmul.f32 -1.442695, %v1207_v31 }
0x1134   :  { %2011 = vpow2.f32 %v1669_v11 }
0x1137   :  { %v1201_v32 = vpop.f32.mrb[36].mxu1 }
0x1138   :  { %v1241_v12 = vadd.f32 %v1201_v32, %v2210_v28  ;;  %v1858_v7 = vpop.f32.mrb[37].mxu1  ;;  %v1234_v34 = vadd.f32 %v1201_v32, %v152_v33 }
0x1139   :  { %v1204_v1 = vpop.f32.mrb[38].mxu1 }
0x113a   :  { %1243 = vrot.lane.b32.xlu1 %v1241_v12, %s2062_s26  ;;  %v1859_v6 = vpop.f32.mrb[39].mxu1  ;;  %v1670_v35 = vmul.f32 -1.442695, %v1234_v34  ;;  %v1929_v34 = vld [vmem:[%s2573_s5] sm:$0xff]  }
0x113c   :  { %2013 = vpow2.f32 %v1670_v35  ;;  %v1930_v35 = vld [vmem:[%s2573_s5 + $0x8] sm:$0xff]  }
0x113e   :  { %v2012_v36 = vpop.eup %2011 }
0x113f   :  { %v1211_v37 = vadd.f32 1.0, %v2012_v36 }
0x1141   :  { %2015 = vrcp.f32 %v1211_v37  ;;  %v1931_v37 = vld [vmem:[%s2573_s5 + $0x10] sm:$0xff]  }
0x1146   :  { %v2014_v39 = vpop.eup %2013 }
0x1147   :  { %v1238_v40 = vadd.f32 1.0, %v2014_v39  ;;  %v1932_v39 = vld [vmem:[%s2573_s5 + $0x18] sm:$0xff]  }
0x1149   :  { %2017 = vrcp.f32 %v1238_v40  ;;  %v1933_v40 = vld [vmem:[%s2573_s5 + $0x20] sm:$0xff]  }
0x114b   :  { %v2016_v41 = vpop.eup %2015 }
0x114c   :  { %v1226_v19 = vsub.f32 1.0, %v2016_v41  ;;  %v1232_v52 = vmul.f32 %v2016_v41, %v2437_v58 }
0x1153   :  { %v2018_v14 = vpop.eup %2017 }
0x1154   :  { %v1253_v54 = vsub.f32 1.0, %v2018_v14  ;;  %v1259_v55 = vmul.f32 %v2018_v14, %v2443_v2 }
0x11a4   :  { %v1217_v43 = vpop.permute.xlu0 %1216 }
0x11a5   :  { %v1219_v44 = vmul.f32 %v2016_v41, %v1217_v43  ;;  %v1934_v41 = vld [vmem:[%s2573_s5 + $0x28] sm:$0xff]   ;;  %v1935_v43 = vld [vmem:[%s2573_s5 + $0x30] sm:$0xff]  }
0x11a7   :  { %1221 = vrot.lane.b32.xlu0 %v1219_v44, %s2062_s26 }
0x11ac   :  { %v1244_v45 = vpop.permute.xlu1 %1243 }
0x11ad   :  { %v1246_v46 = vmul.f32 %v2018_v14, %v1244_v45  ;;  %v1936_v45 = vld [vmem:[%s2573_s5 + $0x38] sm:$0xff]  }
0x11af   :  { %1248 = vrot.lane.b32.xlu1 %v1246_v46, %s2062_s26 }
0x1219   :  { %v1222_v21 = vpop.permute.xlu0 %1221 }
0x121a   :  { %v1224_v47 = vadd.f32 %v1222_v21, %v176_v13 }
0x121c   :  { %2019 = vtanh.f32 %v1224_v47 }
0x1221   :  { %v1249_v48 = vpop.permute.xlu1 %1248 }
0x1222   :  { %v1251_v49 = vadd.f32 %v1249_v48, %v152_v33 }
0x1224   :  { %2021 = vtanh.f32 %v1251_v49 }
0x1226   :  { %v2020_v50 = vpop.eup %2019 }
0x1227   :  { %1228 = vrot.lane.b32.xlu0 %v2020_v50, %s2064_s2 }
0x122e   :  { %v2022_v51 = vpop.eup %2021 }
0x122f   :  { %1255 = vrot.lane.b32.xlu1 %v2022_v51, %s2064_s2 }
0x1299   :  { %v1229_v20 = vpop.permute.xlu0 %1228 }
0x129a   :  { %v1231_v53 = vmul.f32 %v1229_v20, %v1226_v19 }
0x129c   :  { %v2477_v23 = vadd.f32 %v1232_v52, %v1231_v53 }
0x129e   :  { %v1261_v16 = vpack.c.bf16 %v2477_v23, %v2477_v23 }
0x12a0   :  { %1263 = vrot.lane.b32.xlu0 %v1261_v16, %s2064_s2 }
0x12a1   :  { %v1256_v26 = vpop.permute.xlu1 %1255 }
0x12a2   :  { %v1258_v24 = vmul.f32 %v1256_v26, %v1253_v54 }
0x12a4   :  { %v2483_v25 = vadd.f32 %v1259_v55, %v1258_v24 }
0x12a6   :  { %v1308_v56 = vpack.c.bf16 %v2483_v25, %v2483_v25 }
0x12a8   :  { %1310 = vrot.lane.b32.xlu1 %v1308_v56, %s2064_s2  ;;  %v1938_v56 = vld [vmem:[%s2575_s7 + $0x8] sm:$0xff]  }
0x1312   :  { %v1264_v57 = vpop.permute.xlu0 %1263 }
0x1313   :  { %1865 = vmatmul.mubr.msk.bf16.vlgmr.msra.gmra.mrb[32].mxu0 %vm98_vm0, %v1264_v57  ;;  %v1675_v57 = vld [vmem:[%s2574_s6] ss:$0 sm:$0xff] }
0x1314   :  { %1892 = vmatprep.mubr.msk.bf16.mxu0 %vm2063_vm1, %v2061_v8  ;;  %1877 = vmatpush3.bf16.msra.mxu0 %v1929_v34 }
0x1315   :  { %1878 = vmatprep.subr.bf16.mxu0 %v2061_v8 }
0x1318   :  { %1879 = vmatpush3.bf16.msra.mxu0 %v1930_v35 }
0x1319   :  { %1880 = vmatprep.subr.bf16.mxu0 %v2061_v8 }
0x131a   :  { %v1311_v27 = vpop.permute.xlu1 %1310 }
0x131b   :  { %1873 = vmatmul.mubr.msk.bf16.vlgmr.msra.gmra.mrb[40].mxu1 %vm98_vm0, %v1311_v27 }
0x131c   :  { %1900 = vmatprep.mubr.msk.bf16.mxu1 %vm2063_vm1, %v2061_v8  ;;  %1881 = vmatpush3.bf16.msra.mxu0 %v1931_v37 }
0x131d   :  { %1882 = vmatprep.subr.bf16.mxu0 %v2061_v8 }
0x1320   :  { %1883 = vmatpush3.bf16.msra.mxu0 %v1932_v39 }
0x1321   :  { %1884 = vmatprep.subr.bf16.mxu0 %v2061_v8 }
0x1324   :  { %1885 = vmatpush3.bf16.msra.mxu0 %v1933_v40 }
0x1325   :  { %1886 = vmatprep.subr.bf16.mxu0 %v2061_v8 }
0x1328   :  { %1887 = vmatpush3.bf16.msra.mxu0 %v1934_v41 }
0x1329   :  { %1888 = vmatprep.subr.bf16.mxu0 %v2061_v8 }
0x132c   :  { %1889 = vmatpush3.bf16.msra.mxu0 %v1935_v43 }
0x132d   :  { %1890 = vmatprep.subr.bf16.mxu0 %v2061_v8 }
0x1330   :  { %1891 = vmatpush3.bf16.msra.mxu0 %v1936_v45 }
0x13e6   :  { %v1302_v58 = vpop.f32.mrb[32].mxu0 }
0x13e7   :  { %v1362_v59 = vadd.f32 %v1302_v58, %v2206_v22  ;;  %v1866_v60 = vpop.f32.mrb[33].mxu0  ;;  %v1355_v4 = vadd.f32 %v1302_v58, %v180_v15  ;;  %v148_v22 = vadd.f32 %v2198_v17, %v2220_v42 }
0x13e8   :  { %v1305_v61 = vpop.f32.mrb[34].mxu0 }
0x13e9   :  { %1364 = vrot.lane.b32.xlu0 %v1362_v59, %s2062_s26  ;;  %v1867_v62 = vpop.f32.mrb[35].mxu0  ;;  %v1673_v29 = vmul.f32 -1.442695, %v1355_v4 }
0x13eb   :  { %2023 = vpow2.f32 %v1673_v29 }
0x13ee   :  { %v1349_v63 = vpop.f32.mrb[40].mxu1 }
0x13ef   :  { %v1389_v2 = vadd.f32 %v1349_v63, %v2210_v28  ;;  %v1874_v3 = vpop.f32.mrb[41].mxu1  ;;  %v1382_v10 = vadd.f32 %v1349_v63, %v148_v22 }
0x13f0   :  { %v1352_v0 = vpop.f32.mrb[42].mxu1 }
0x13f1   :  { %1391 = vrot.lane.b32.xlu1 %v1389_v2, %s2062_s26  ;;  %v1875_v9 = vpop.f32.mrb[43].mxu1  ;;  %v1674_v30 = vmul.f32 -1.442695, %v1382_v10 }
0x13f3   :  { %2025 = vpow2.f32 %v1674_v30 }
0x13f5   :  { %v2024_v5 = vpop.eup %2023 }
0x13f6   :  { %v1359_v32 = vadd.f32 1.0, %v2024_v5 }
0x13f8   :  { %2027 = vrcp.f32 %v1359_v32 }
0x13fd   :  { %v2026_v28 = vpop.eup %2025 }
0x13fe   :  { %v1386_v12 = vadd.f32 1.0, %v2026_v28 }
0x1400   :  { %2029 = vrcp.f32 %v1386_v12 }
0x1402   :  { %v2028_v7 = vpop.eup %2027 }
0x1403   :  { %v1374_v44 = vsub.f32 1.0, %v2028_v7  ;;  %v1380_v46 = vmul.f32 %v2028_v7, %v2477_v23 }
0x140a   :  { %v2030_v18 = vpop.eup %2029 }
0x140b   :  { %v1401_v49 = vsub.f32 1.0, %v2030_v18  ;;  %v1407_v51 = vmul.f32 %v2030_v18, %v2483_v25  ;;  %v1937_v25 = vld [vmem:[%s2575_s7] sm:$0xff]   ;;  %s1614_s7 = sshll.u32 %s2066_s0, 4  ;;  %s1615_s7 = int_to_ptr.vmem [resolvable:$true] %s1614_s7 }
0x140c   :  { %1897 = vmatpush3.bf16.msra.mxu1 %v1937_v25  ;;  %s2036_s6 = scalar_lea.vmem %s1615_s7, 32  ;;  %p2041_p1 = scmp.lt.s32.totalorder %s1615_s7, %s1615_s7 }
0x140d   :  { %1898 = vmatprep.subr.bf16.mxu1 %v2061_v8  ;;  %v1684_v8 = vld [vmem:[%s2576_s8] ss:$0 sm:$0xff]  ;;  %p2037_p0 = scmp.ne.s32.totalorder %s1615_s7, %s2036_s6  ;;  %p2042_p2 = scmp.lt.s32.totalorder %s2036_s6, %s2036_s6 }
0x140f   :  { %p2043_p3 = por %p2042_p2, %p2041_p1 }
0x1410   :  { %1899 = vmatpush3.bf16.msra.mxu1 %v1938_v56 }
0x1411   :  { %p2044_p4 = pnand %p2043_p3, %p2037_p0 }
0x145b   :  { %v1365_v1 = vpop.permute.xlu0 %1364 }
0x145c   :  { %v1367_v6 = vmul.f32 %v2028_v7, %v1365_v1 }
0x145e   :  { %1369 = vrot.lane.b32.xlu0 %v1367_v6, %s2062_s26 }
0x1463   :  { %v1392_v38 = vpop.permute.xlu1 %1391 }
0x1464   :  { %v1394_v13 = vmul.f32 %v2030_v18, %v1392_v38 }
0x1466   :  { %1396 = vrot.lane.b32.xlu1 %v1394_v13, %s2062_s26 }
0x14d0   :  { %v1370_v17 = vpop.permute.xlu0 %1369 }
0x14d1   :  { %v1372_v42 = vadd.f32 %v1370_v17, %v180_v15 }
0x14d3   :  { %2031 = vtanh.f32 %v1372_v42 }
0x14d8   :  { %v1397_v31 = vpop.permute.xlu1 %1396 }
0x14d9   :  { %v1399_v11 = vadd.f32 %v1397_v31, %v148_v22 }
0x14db   :  { %2033 = vtanh.f32 %v1399_v11 }
0x14dd   :  { %v2032_v33 = vpop.eup %2031 }
0x14de   :  { %1376 = vrot.lane.b32.xlu0 %v2032_v33, %s2064_s2 }
0x14e5   :  { %v2034_v36 = vpop.eup %2033 }
0x14e6   :  { %1403 = vrot.lane.b32.xlu1 %v2034_v36, %s2064_s2 }
0x1550   :  { %v1377_v14 = vpop.permute.xlu0 %1376 }
0x1551   :  { %v1379_v21 = vmul.f32 %v1377_v14, %v1374_v44 }
0x1553   :  { %v1381_v47 = vadd.f32 %v1380_v46, %v1379_v21 }
0x1555   :  { %1410 = vrot.lane.b32.xlu0 %v1381_v47, %s2064_s2  ;;  %v1413_v48 = vrot.slane %v1381_v47, 2 }
0x1557   :  { %1414 = vrot.lane.b32.xlu1 %v1413_v48, %s2065_s11 }
0x1558   :  { %v1404_v50 = vpop.permute.xlu1 %1403 }
0x1559   :  { %v1406_v19 = vmul.f32 %v1404_v50, %v1401_v49 }
0x155b   :  { %v1408_v20 = vadd.f32 %v1407_v51, %v1406_v19 }
0x155d   :  { %v1418_v52 = vrot.slane %v1408_v20, 2 }
0x155f   :  { %1419 = vrot.lane.b32.xlu0 %v1418_v52, %s2062_s26 }
0x15c7   :  { %v1411_v53 = vpop.permute.xlu0 %1410 }
0x15c8   :  { %v1422_v23 = vsel %vm98_vm0, %v1411_v53, %v1408_v20 }
0x15c9   :  { %v1415_v16 = vpop.permute.xlu1 %1414 }
0x15ca   :  { %v1424_v54 = vsel %vm1423_vm2, %v1422_v23, %v1415_v16 }
0x15d1   :  { %v1420_v26 = vpop.permute.xlu0 %1419 }
0x15d2   :  { %v1426_v55 = vsel %vm1425_vm3, %v1424_v54, %v1420_v26 }
0x15d3   :  { %v1427_v24 = vpack.c.bf16 %v1426_v55, %v1426_v55 }
0x15d5   :  { %1893 = vmatmul.mubr.bf16.vlgmr.msra.gmra.mrb[36].mxu0 %v1427_v24 }
0x16a8   :  { %v1533_v27 = vpop.f32.mrb[36].mxu0 }
0x16a9   :  { %v1534_v58 = vadd.f32 %v1675_v57, %v1533_v27  ;;  %v1894_v59 = vpop.f32.mrb[37].mxu0 }
0x16aa   :  { %v1536_v60 = vpop.f32.mrb[38].mxu0 }
0x16ab   :  { %v1539_v61 = vmax.f32 %v1534_v58, 0.0  ;;  %v1895_v62 = vpop.f32.mrb[39].mxu0 }
0x16ad   :  { %v1540_v63 = vpack.c.bf16 %v1539_v61, %v1539_v61 }
0x16af   :  { %1901 = vmatmul.mubr.msk.bf16.vlgmr.msra.gmra.mrb[44].mxu1 %vm98_vm0, %v1540_v63 }
0x1782   :  { %v1601_v2 = vpop.f32.mrb[44].mxu1 }
0x1783   :  { %v1602_v3 = vadd.f32 %v1684_v8, %v1601_v2  ;;  %v1902_v0 = vpop.f32.mrb[45].mxu1 }
0x1784   :  { %v1604_v9 = vpop.f32.mrb[46].mxu1 }
0x1785   :  { %1607 = vst [vmem:[#allocation2] sm:$0x3] %v1602_v3  ;;  %v1903_v15 = vpop.f32.mrb[47].mxu1 }
0x1786   :  { %2047 = shalt.err (!%p2044_p4)
}
0x1787   :  { %s2048_s8 = scalar_lea.hbm %s2577_s9, 32 }
0x1788   :  { %p2049_p5 = scmp.ne.s32.totalorder %s2577_s9, %s2048_s8  ;;  %p2052_p6 = scmp.lt.u32.totalorder %s2048_s8, %s2577_s9 }
0x178a   :  { %p2054_p7 = pnand %p2052_p6, %p2049_p5 }
0x178c   :  { %2057 = shalt.err (!%p2054_p7)
}
0x178d   :  { %1617 = dma.vmem_to_hbm [thread:$0]  %s1615_s7, 32, %s2577_s9, [#allocation3]  }
0x178e   :  { %2058 = dma.done.wait [#allocation3], 32  }
0x178f   :  { %2059 = vsyncadd [#allocation3], 4294967264 }
0x1790   :  { %1621 = vsyncpa [#allocation3], 1 }

</bundles_post_ra>
